<compile_context>
chip_gen: v7x
topology: tpu7x:2x2x1
jax: 0.10.0
libtpu: 0.0.40
codegen_flags: <defaults>
</compile_context>

<pallas_src>
import itertools
from functools import partial

import numpy as np
import jax
import jax.numpy as jnp
from jax.experimental import pallas as pl
from jax.experimental.pallas import tpu as pltpu


# ----------------------------------------------------------------------------
# Kernel: K-packed brute-force assignment search with a running-min accumulator.
#   p_ref  : (tile_p, PACK*N*N) int8  -- PACK flattened one-hot perms per row.
#   hi_ref : (PACK*N*N, PACK*B_pad) bf16 -- block-diagonal cost RHS, high part.
#   lo_ref : (PACK*N*N, PACK*B_pad) bf16 -- block-diagonal cost RHS, low part.
#   o_ref  : (1, 1, PACK*B_pad) f32   -- per-chunk running minimum (revisited
#            output block across the trailing "arbitrary" grid axis).
# ----------------------------------------------------------------------------
def _assign_kernel(p_ref, hi_ref, lo_ref, o_ref):
    t = pl.program_id(1)

    @pl.when(t == 0)
    def _():
        o_ref[...] = jnp.full(o_ref.shape, jnp.inf, o_ref.dtype)

    # int8 0/1 -> bf16 is exact; bf16 LHS keeps the matmul at 2 MXU passes.
    p = p_ref[...].astype(jnp.bfloat16)                       # (tile_p, PACK*NN)
    acc = jnp.dot(p, hi_ref[...], preferred_element_type=jnp.float32)
    acc = acc + jnp.dot(p, lo_ref[...], preferred_element_type=jnp.float32)
    tile_min = jnp.min(acc, axis=0, keepdims=True)            # (1, PACK*B_pad)
    o_ref[...] = jnp.minimum(o_ref[...], tile_min[None])


# ----------------------------------------------------------------------------
# Host-side preparation of the packed permutation one-hot matrix.
# ----------------------------------------------------------------------------
def prepare_packed_perms(N, pack=4, num_chunks=2, steps_per_chunk=4):
    """Returns (packed int8 array, pack, num_chunks, steps, tile_p)."""
    assert N <= 9, "brute-force N! search only supported for N <= 9"
    assert 128 % pack == 0
    NN = N * N
    perms = np.array(list(itertools.permutations(range(N))), dtype=np.int64)
    nperm = perms.shape[0]

    onehot = np.zeros((nperm, NN), dtype=np.int8)
    onehot[np.arange(nperm)[:, None], np.arange(N)[None, :] * N + perms] = 1

    # Identity permutation one-hot (used for padding; its cost >= the true min,
    # so padding never changes the result).
    ident = np.zeros((1, NN), dtype=np.int8)
    ident[0, np.arange(N) * N + np.arange(N)] = 1

    # Pad #perms to a multiple of `pack`, then pack `pack` perms per row (K dim).
    pad_n = (-nperm) % pack
    if pad_n:
        onehot = np.concatenate([onehot, np.tile(ident, (pad_n, 1))], axis=0)
    rows = onehot.shape[0] // pack
    packed = onehot.reshape(rows, pack * NN)

    # Pad rows so each chunk is steps_per_chunk tiles of tile_p rows,
    # with tile_p a multiple of 32 (int8 sublane-tile granularity).
    per_chunk = -(-rows // num_chunks)
    tile_p = -(-per_chunk // steps_per_chunk)
    tile_p = -(-tile_p // 32) * 32
    per_chunk = tile_p * steps_per_chunk
    total = per_chunk * num_chunks
    if total > rows:
        pad_row = np.tile(ident, (1, pack))                   # (1, pack*NN)
        packed = np.concatenate(
            [packed, np.tile(pad_row, (total - rows, 1))], axis=0)

    return (jnp.asarray(packed, dtype=jnp.int8),
            pack, num_chunks, steps_per_chunk, tile_p)


# ----------------------------------------------------------------------------
# Wrapper: HungarianLoss.forward(input, target, batch_mean=True)
# ----------------------------------------------------------------------------
@partial(jax.jit,
         static_argnames=("pack", "num_chunks", "steps", "tile_p", "batch_mean"))
def hungarian_loss(inp, target, packed_perms, *, pack, num_chunks, steps,
                   tile_p, batch_mean=True):
    B, N, D = inp.shape
    NN = N * N
    assert packed_perms.shape == (num_chunks * steps * tile_p, pack * NN)

    x = inp.astype(jnp.float32)
    y = target.astype(jnp.float32)

    # Pairwise squared-L2 cost matrix via direct differences (no cancellation,
    # no matmul-precision concerns); ~64 KB of fused XLA elementwise work.
    diff = x[:, :, None, :] - y[:, None, :, :]                # (B, N, N, D)
    cost = jnp.sum(diff * diff, axis=-1)                      # (B, N, N)

    # (NN, B_pad) cost, lane-padded so PACK * B_pad is a multiple of 128.
    base = max(1, 128 // pack)
    B_pad = -(-B // base) * base
    ct = cost.reshape(B, NN).T                                # (NN, B)
    ct = jnp.pad(ct, ((0, 0), (0, B_pad - B)))                # (NN, B_pad)

    # Block-diagonal RHS for the K-packed matmul, split into exact bf16 hi+lo.
    zero = jnp.zeros_like(ct)
    bd = jnp.concatenate(
        [jnp.concatenate([ct if q == r else zero for q in range(pack)], axis=1)
         for r in range(pack)], axis=0)                       # (pack*NN, pack*B_pad) f32
    bd_hi = bd.astype(jnp.bfloat16)
    bd_lo = (bd - bd_hi.astype(jnp.float32)).astype(jnp.bfloat16)

    mins = pl.pallas_call(
        _assign_kernel,
        out_shape=jax.ShapeDtypeStruct((num_chunks, 1, pack * B_pad),
                                       jnp.float32),
        grid_spec=pltpu.PrefetchScalarGridSpec(
            num_scalar_prefetch=0,
            grid=(num_chunks, steps),
            in_specs=[
                # Streamed, lane-dense int8 one-hot rows (double-buffered DMA).
                pl.BlockSpec((tile_p, pack * NN),
                             lambda c, t: (c * steps + t, 0)),
                # Constant block index -> DMA'd once, resident in VMEM.
                pl.BlockSpec((pack * NN, pack * B_pad), lambda c, t: (0, 0)),
                pl.BlockSpec((pack * NN, pack * B_pad), lambda c, t: (0, 0)),
            ],
            out_specs=pl.BlockSpec((1, 1, pack * B_pad),
                                   lambda c, t: (c, 0, 0)),
        ),
        compiler_params=pltpu.CompilerParams(
            dimension_semantics=("parallel", "arbitrary")),
    )(packed_perms, bd_hi, bd_lo)                             # (chunks, 1, pack*B_pad)

    # Fold: per (chunk, pack-slot) minima -> per-batch minimum.
    per = mins.reshape(num_chunks, pack, B_pad)[:, :, :B]     # (chunks, pack, B)
    per_batch = jnp.min(per, axis=(0, 1))                     # (B,)
    return jnp.mean(per_batch) if batch_mean else per_batch


# ----------------------------------------------------------------------------
# Pure numpy reference for validation.
# ----------------------------------------------------------------------------
def ref_hungarian_loss(inp, target, batch_mean=True):
    x = np.asarray(inp, dtype=np.float64)
    y = np.asarray(target, dtype=np.float64)
    B, N, _ = x.shape
    perms = np.array(list(itertools.permutations(range(N))), dtype=np.int64)
    losses = []
    for b in range(B):
        C = ((x[b][:, None, :] - y[b][None, :, :]) ** 2).sum(-1)   # (N, N)
        per_perm = C[np.arange(N)[None, :], perms].sum(-1)         # (N!,)
        losses.append(per_perm.min())
    losses = np.array(losses)
    return losses.mean() if batch_mean else losses


if __name__ == "__main__":
    B, N, D = 2, 8, 32   # batch, set size, feature dim

    key = jax.random.PRNGKey(0)
    k1, k2 = jax.random.split(key)
    x = jax.random.normal(k1, (B, N, D), dtype=jnp.float32)
    y = jax.random.normal(k2, (B, N, D), dtype=jnp.float32)

    packed, pack, num_chunks, steps, tile_p = prepare_packed_perms(N)

    loss = jax.block_until_ready(
        hungarian_loss(x, y, packed, pack=pack, num_chunks=num_chunks,
                       steps=steps, tile_p=tile_p, batch_mean=True))
    loss_per_batch = jax.block_until_ready(
        hungarian_loss(x, y, packed, pack=pack, num_chunks=num_chunks,
                       steps=steps, tile_p=tile_p, batch_mean=False))

    ref_mean = ref_hungarian_loss(x, y, batch_mean=True)
    ref_pb = ref_hungarian_loss(x, y, batch_mean=False)

    assert np.allclose(np.asarray(loss), ref_mean, rtol=1e-4, atol=1e-3), (
        loss, ref_mean)
    assert np.allclose(np.asarray(loss_per_batch), ref_pb,
                       rtol=1e-4, atol=1e-3), (loss_per_batch, ref_pb)

    print("KERNEL_OK")
</pallas_src>

<mosaic_0001>
module attributes {stable_mosaic.version = 11 : i64} {
  func.func @_assign_kernel(%arg0: i32, %arg1: i32, %arg2: memref<1280x256xi8, #tpu.memory_space<vmem>>, %arg3: memref<256x128xbf16, #tpu.memory_space<vmem>>, %arg4: memref<256x128xbf16, #tpu.memory_space<vmem>>, %arg5: memref<1x1x128xf32, #tpu.memory_space<vmem>>) attributes {dimension_semantics = [#tpu.dimension_semantics<parallel>, #tpu.dimension_semantics<arbitrary>], iteration_bounds = array<i64: 2, 4>, scalar_prefetch = 0 : i64, scratch_operands = 0 : i64, tpu.core_type = #tpu.core_type<tc>, window_params = [{transform_indices = @transform_0, window_bounds = array<i64: 1280, 256>}, {pipeline_mode = #tpu.pipeline_mode<synchronous>, transform_indices = @transform_1, window_bounds = array<i64: 256, 128>}, {pipeline_mode = #tpu.pipeline_mode<synchronous>, transform_indices = @transform_2, window_bounds = array<i64: 256, 128>}, {transform_indices = @transform_3, window_bounds = array<i64: 1, 1, 128>}]} {
    %c0_i32 = arith.constant 0 : i32
    %0 = arith.cmpi eq, %arg1, %c0_i32 : i32
    %1 = arith.extui %0 : i1 to i32
    %c0_i32_0 = arith.constant 0 : i32
    %2 = arith.cmpi ne, %1, %c0_i32_0 : i32
    scf.if %2 {
      %cst_14 = arith.constant 0x7F800000 : f32
      %16 = vector.broadcast %cst_14 : f32 to vector<1x1x128xf32>
      %c0_15 = arith.constant 0 : index
      %c0_16 = arith.constant 0 : index
      %c0_17 = arith.constant 0 : index
      %17 = vector.load %arg5[%c0_15, %c0_16, %c0_17] : memref<1x1x128xf32, #tpu.memory_space<vmem>>, vector<1x1x128xf32>
      tpu.vector_store %arg5[%c0_15, %c0_16, %c0_17], %16 {strides = array<i32>} : memref<1x1x128xf32, #tpu.memory_space<vmem>>, vector<1x1x128xf32>,
    } else {
    }
    %c0 = arith.constant 0 : index
    %c0_1 = arith.constant 0 : index
    %3 = vector.load %arg2[%c0, %c0_1] : memref<1280x256xi8, #tpu.memory_space<vmem>>, vector<1280x256xi8>
    %4 = arith.sitofp %3 : vector<1280x256xi8> to vector<1280x256xbf16>
    %c0_2 = arith.constant 0 : index
    %c0_3 = arith.constant 0 : index
    %5 = vector.load %arg3[%c0_2, %c0_3] : memref<256x128xbf16, #tpu.memory_space<vmem>>, vector<256x128xbf16>
    %cst = arith.constant dense<0.000000e+00> : vector<1280x128xf32>
    %6 = tpu.matmul %4, %5, %cst {dimension_numbers = #tpu.dot_dimension_numbers<[1], [0], [0], [1], [0, 0, 1, 1], [], []>} : vector<1280x256xbf16>, vector<256x128xbf16>, vector<1280x128xf32> -> vector<1280x128xf32>
    %c0_4 = arith.constant 0 : index
    %c0_5 = arith.constant 0 : index
    %7 = vector.load %arg4[%c0_4, %c0_5] : memref<256x128xbf16, #tpu.memory_space<vmem>>, vector<256x128xbf16>
    %cst_6 = arith.constant dense<0.000000e+00> : vector<1280x128xf32>
    %8 = tpu.matmul %4, %7, %cst_6 {dimension_numbers = #tpu.dot_dimension_numbers<[1], [0], [0], [1], [0, 0, 1, 1], [], []>} : vector<1280x256xbf16>, vector<256x128xbf16>, vector<1280x128xf32> -> vector<1280x128xf32>
    %9 = arith.addf %6, %8 : vector<1280x128xf32>
    %cst_7 = arith.constant dense<0x7F800000> : vector<128xf32>
    %10 = vector.multi_reduction <minimumf>, %9, %cst_7 [0] : vector<1280x128xf32> to vector<128xf32>
    %11 = vector.shape_cast %10 : vector<128xf32> to vector<1x128xf32>
    %c0_8 = arith.constant 0 : index
    %c0_9 = arith.constant 0 : index
    %c0_10 = arith.constant 0 : index
    %12 = vector.load %arg5[%c0_8, %c0_9, %c0_10] : memref<1x1x128xf32, #tpu.memory_space<vmem>>, vector<1x1x128xf32>
    %13 = vector.shape_cast %11 : vector<1x128xf32> to vector<1x1x128xf32>
    %14 = arith.minimumf %12, %13 : vector<1x1x128xf32>
    %c0_11 = arith.constant 0 : index
    %c0_12 = arith.constant 0 : index
    %c0_13 = arith.constant 0 : index
    %15 = vector.load %arg5[%c0_11, %c0_12, %c0_13] : memref<1x1x128xf32, #tpu.memory_space<vmem>>, vector<1x1x128xf32>
    tpu.vector_store %arg5[%c0_11, %c0_12, %c0_13], %14 {strides = array<i32>} : memref<1x1x128xf32, #tpu.memory_space<vmem>>, vector<1x1x128xf32>,
    return
  }
  func.func @transform_0(%arg0: i32, %arg1: i32) -> (i32, i32) {
    %c4_i32 = arith.constant 4 : i32
    %0 = arith.muli %arg0, %c4_i32 : i32
    %1 = arith.addi %0, %arg1 : i32
    %c0_i32 = arith.constant 0 : i32
    %c0_i32_0 = arith.constant 0 : i32
    return %1, %c0_i32 : i32, i32
  }
  func.func @transform_1(%arg0: i32, %arg1: i32) -> (i32, i32) {
    %c0_i32 = arith.constant 0 : i32
    %c0_i32_0 = arith.constant 0 : i32
    %c0_i32_1 = arith.constant 0 : i32
    return %c0_i32, %c0_i32_0 : i32, i32
  }
  func.func @transform_2(%arg0: i32, %arg1: i32) -> (i32, i32) {
    %c0_i32 = arith.constant 0 : i32
    %c0_i32_0 = arith.constant 0 : i32
    %c0_i32_1 = arith.constant 0 : i32
    return %c0_i32, %c0_i32_0 : i32, i32
  }
  func.func @transform_3(%arg0: i32, %arg1: i32) -> (i32, i32, i32) {
    %c0_i32 = arith.constant 0 : i32
    %c0_i32_0 = arith.constant 0 : i32
    %c0_i32_1 = arith.constant 0 : i32
    return %arg0, %c0_i32, %c0_i32_0 : i32, i32, i32
  }
}

</mosaic_0001>

<bundles_post_ra>
// kernel: hungarian_loss.1
= control target key start
LH: loop header
LB: loop body
LE: loop exit
PB: predicated region body
PF: predicated region fallthrough
CT: control target
= control target key end

     0   :  { %8 = vsyncpa [#allocation3], 0  ;;  %s3248_s0 = inlined_call_operand.hbm [shape: s8[10240,256], index: 0, kind: input, shape index: {}]   ;;  %s3249_s1 = inlined_call_operand.vmem [shape: bf16[256,128], index: 1, kind: input, shape index: {}]   ;;  %s3250_s2 = inlined_call_operand.vmem [shape: bf16[256,128], index: 2, kind: input, shape index: {}]   ;;  %s3251_s3 = inlined_call_operand.vmem [shape: f32[2,1,128], index: 3, kind: output, shape index: {}]  }
   0x1   :  { %10 = vsyncpa [#allocation3 + $0x1], 0  ;;  %s2737_s12 = smov 0   ;;  %s2739_s13 = smov 0  }
   0x2   :  { %s2741_s14 = smov 0   ;;  %s2743_s15 = smov 0  }
   0x3   :  { %s2745_s16 = smov 0   ;;  %s2747_s17 = smov 0  }
   0x4   :  { %s2749_s18 = smov 0   ;;  %s2751_s19 = smov 0  }
   0x5 LB: > { %s2297_s20 = sadd.s32 4294967295, %s2710_s19   ;;  %s25_s21 = sadd.s32 1, %s2702_s17  ;;  %s2710_s19 = sphi %s2751_s19, %s16_s19   ;;  %s2706_s18 = sphi %s2749_s18, %s3260_s18   ;;  %s2702_s17 = sphi %s2747_s17, %s3259_s17   ;;  %s2698_s16 = sphi %s2745_s16, %s3258_s16   ;;  %s2694_s15 = sphi %s2743_s15, %s3257_s15   ;;  %s2690_s14 = sphi %s2741_s14, %s3256_s14   ;;  %s2686_s13 = sphi %s2739_s13, %s3255_s13   ;;  %s2682_s12 = sphi %s2737_s12, %s3254_s12  }
   0x6   : > { %p26_p0 = scmp.ge.s32.totalorder %s25_s21, 4  ;;  %s28_s22 = sadd.s32 1, %s2706_s18 }
   0x7   : > { %s2299_s23 = sshll.u32 %s2706_s18, 2  ;;  %s39_s24 = sadd.s32 1, %s2690_s14 }
   0x8   : > { %s3262_s21 = smov (%p26_p0, %s25_s21), 0  ;;  %s3264_s22 = smov (!%p26_p0, %s28_s22), %s2706_s18 }
   0x9   : > { %s33_s25 = sadd.s32 %s2702_s17, %s2299_s23  ;;  %p46_p1 = scmp.ne.s32.totalorder %s2690_s14, %s2686_s13 }
   0xa   : > { %p30_p2 = scmp.ge.s32.totalorder %s3264_s22, 2  ;;  %p47_p3 = scmp.eq.s32.totalorder %s2710_s19, 0 }
   0xb   : > { %p52_p4 = scmp.ne.s32.totalorder %s2686_s13, %s2682_s12  ;;  %p53_p5 = scmp.eq.s32.totalorder %s2297_s20, 0 }
   0xc   : > { %s3266_s22 = smov (%p30_p2, %s3264_s22), 0  ;;  %p48_p6 = por %p47_p3, %p46_p1 }
   0xd   : > { %p2790_p7 = por %p53_p5, %p52_p4  ;;  %s2300_s27 = sshll.u32 %s3266_s22, 2 }
   0xe   : > { %s35_s28 = sadd.s32 %s2300_s27, %s3262_s21  ;;  %p2513_p8 = scmp.lt.s32.totalorder %s2710_s19, 8 }
   0xf   : > { %s36_s29 = ssub.s32 %s33_s25, %s35_s28  ;;  %s150_s30 = sand.u32 1, %s2690_s14  }
  0x10   : > { %p37_p9 = scmp.eq.s32.totalorder %s36_s29, 0  ;;  %s2505_s4 = smul.u32 640, %s150_s30 }
  0x11   : > { %p2798_p10 = pnand %p2513_p8, %p48_p6  ;;  %s2344_s7 = smul.u32 10240, %s33_s25 }
  0x12   : > { %s2803_s6 = scalar_select %p37_p9, %s2690_s14, %s39_s24  }
  0x13   : > { %s154_s8 = scalar_lea.vmem [#allocation2], %s2505_s4  ;;  %s2808_s12 = scalar_lea.hbm %s3248_s0, %s2344_s7 }
  0x14   : > { %s164_s9 = sshll.u32 %s154_s8, 4  ;;  %s2812_s20 = scalar_lea.sflag [#allocation3], %s150_s30  ;;  %s2810_s9 = int_to_ptr.vmem [resolvable:$true] %s164_s9 }
  0x15   : > { %s2614_s23 = scalar_lea.hbm %s2808_s12, 10240  ;;  %p2616_p12 = pneg %p2798_p10 }
  0x16   : > { %p2615_p11 = scmp.ne.s32.totalorder %s2808_s12, %s2614_s23  ;;  %s2619_s27 = scalar_lea.hbm %s3248_s0, 81920 }
  0x17   : > { %p2620_p1 = scmp.lt.u32.totalorder %s2808_s12, %s3248_s0  ;;  %p2621_p2 = scmp.lt.u32.totalorder %s2619_s27, %s2614_s23 }
  0x18   : > { %p2617_p13 = pnand %p2616_p12, %p2615_p11  ;;  %p2623_p4 = scmp.lt.u32.totalorder %s2614_s23, %s2808_s12 }
  0x19   : > { %p2622_p3 = por %p2621_p2, %p2620_p1 }
  0x1a   : > { %p2618_p0 = pneg %p2617_p13 }
  0x1b   : > { %p2624_p5 = por %p2623_p4, %p2622_p3 }
  0x1d   : > { %p2625_p6 = pnand %p2624_p5, %p2618_p0 }
  0x1f   : > { %2628 = shalt.err (!%p2625_p6)
}
  0x20   : > { %s2629_s30 = scalar_lea.vmem %s2810_s9, 10240  ;;  %s2712_s4 = smov [#allocation2]  }
  0x21   : > { %p2630_p8 = scmp.ne.s32.totalorder %s2810_s9, %s2629_s30  ;;  %s2634_s7 = sshll.u32 %s2712_s4, 4  ;;  %s2635_s7 = int_to_ptr.vmem [resolvable:$false] %s2634_s7 }
  0x22   : > { %s2636_s8 = scalar_lea.vmem %s2635_s7, 20480  ;;  %p2637_p13 = scmp.lt.s32.totalorder %s2810_s9, %s2635_s7 }
  0x23   : > { %p2632_p9 = pnand %p2630_p8, %p2616_p12  ;;  %p2638_p1 = scmp.lt.s32.totalorder %s2636_s8, %s2629_s30 }
  0x25   : > { %p2633_p11 = pneg %p2632_p9  ;;  %p2639_p2 = por %p2638_p1, %p2637_p13 }
  0x27   : > { %p2640_p3 = pnand %p2639_p2, %p2633_p11 }
  0x29   : > { %2643 = shalt.err (!%p2640_p3)
}
  0x2a   : > { %s2713_s10 = smov 256   ;;  %s2714_s11 = smov 16  }
  0x2b   : > { %2512 = dma.hbm_to_vmem [thread:$0]  (!%p2798_p10), %s2808_s12, 10240, %s2810_s9, %s2812_s20, %s2713_s10, %s2713_s10, %s2714_s11  }
  0x2c   : > { %p2306_p12 = scmp.ge.s32.totalorder %s2710_s19, 1  ;;  %p172_p0 = scmp.lt.s32.totalorder %s2710_s19, 9 }
  0x2e   : > { %p173_p4 = pnand %p2306_p12, %p172_p0 }
  0x2f   : > { %s178_s23 = sand.u32 (!%p173_p4), 1, %s2686_s13  }
  0x30   : > { %176 = sbr.rel (%p173_p4) target bundleno = 999 (0x3e7), region = 32  ;;  %s179_s25 = scalar_lea.sflag (!%p173_p4), [#allocation3], %s178_s23 }
  0x31   : > { %s2506_s24 = smul.u32 (!%p173_p4), 640, %s178_s23 }
  0x33   : > { %s2843_s27 = scalar_lea.vmem (!%p173_p4), [#allocation2], %s2506_s24 }
  0x37   : > { %2677 = dma.done.wait (%p2790_p7), %s179_s25, 10240  }
  0x38   : > { %2679 = vsyncadd (%p2790_p7), %s179_s25, 4294957056  ;;  %p206_p5 = scmp.lt.s32.totalorder %s2698_s16, 1  ;;  %p2307_p10 = scmp.ne.s32.totalorder %s2694_s15, 0 }
  0x39   : > { %v2715_v0 = vmov (!%p2307_p10), inf  }
  0x3a   : > { %s3268_s16 = smov (!%p206_p5, %s2698_s16), 1  ;;  %213 = sbr.rel (%p2307_p10) target bundleno = 65 (0x41), region = 40 }
  0x3b   : > { %s2854_s12 = scalar_lea.vmem %s3251_s3, %s3268_s16 }
  0x3c   : > { %214 = vst [vmem:[%s2854_s12] sm:$0x1] (!%p2307_p10), %v2715_v0 }
  0x41 PF: > { %v2582_v1 = vld [vmem:[%s3250_s2] sm:$0xff]   ;;  %v2716_v2 = vmov 0   ;;  %v2584_v4 = vld [vmem:[%s3250_s2 + $0x8] sm:$0xff]   ;;  %v2586_v6 = vld [vmem:[%s3250_s2 + $0x10] sm:$0xff]  }
  0x42   : > { %615 = vmatprep.subr.bf16.mxu1 %v2716_v2  ;;  %1384 = vmatprep.subr.bf16.mxu0 %v2716_v2  ;;  %v2583_v3 = vld [vmem:[%s3249_s1] sm:$0xff]   ;;  %v2585_v5 = vld [vmem:[%s3249_s1 + $0x8] sm:$0xff]   ;;  %v2587_v7 = vld [vmem:[%s3249_s1 + $0x10] sm:$0xff]  }
  0x43   : > { %616 = vmatpush1.bf16.msra.mxu1 %v2582_v1  ;;  %1385 = vmatpush1.bf16.msra.mxu0 %v2583_v3  ;;  %v2588_v8 = vld [vmem:[%s3250_s2 + $0x18] sm:$0xff]   ;;  %v2590_v10 = vld [vmem:[%s3250_s2 + $0x20] sm:$0xff]   ;;  %v2592_v12 = vld [vmem:[%s3250_s2 + $0x28] sm:$0xff]  }
  0x44   : > { %617 = vmatprep.subr.bf16.mxu1 %v2716_v2  ;;  %1386 = vmatprep.subr.bf16.mxu0 %v2716_v2  ;;  %v2589_v9 = vld [vmem:[%s3249_s1 + $0x18] sm:$0xff]   ;;  %v2591_v11 = vld [vmem:[%s3249_s1 + $0x20] sm:$0xff]   ;;  %v2593_v13 = vld [vmem:[%s3249_s1 + $0x28] sm:$0xff]  }
  0x45   : > { %v2594_v14 = vld [vmem:[%s3250_s2 + $0x30] sm:$0xff]   ;;  %v2596_v16 = vld [vmem:[%s3250_s2 + $0x38] sm:$0xff]   ;;  %v2598_v18 = vld [vmem:[%s3250_s2 + $0x40] sm:$0xff]  }
  0x46   : > { %v2595_v15 = vld [vmem:[%s3249_s1 + $0x30] sm:$0xff]   ;;  %v2597_v17 = vld [vmem:[%s3249_s1 + $0x38] sm:$0xff]   ;;  %v2599_v19 = vld [vmem:[%s3249_s1 + $0x40] sm:$0xff]  }
  0x47   : > { %618 = vmatpush1.bf16.msra.mxu1 %v2584_v4  ;;  %1387 = vmatpush1.bf16.msra.mxu0 %v2585_v5  ;;  %v216_v20 = vld [vmem:[%s2843_s27 + $0x8] sm:$0xff]  ;;  %v2602_v24 = vld [vmem:[%s3250_s2 + $0x50] sm:$0xff]   ;;  %v2604_v26 = vld [vmem:[%s3250_s2 + $0x58] sm:$0xff]  }
  0x48   : > { %619 = vmatprep.subr.bf16.mxu1 %v2716_v2  ;;  %1388 = vmatprep.subr.bf16.mxu0 %v2716_v2  ;;  %v296_v21 = vunpack.c.l.s8.bf16 %v216_v20  ;;  %v2600_v22 = vld [vmem:[%s3250_s2 + $0x48] sm:$0xff]   ;;  %v2603_v25 = vld [vmem:[%s3249_s1 + $0x50] sm:$0xff]   ;;  %v2605_v27 = vld [vmem:[%s3249_s1 + $0x58] sm:$0xff]   ;;  %v298_v38 = vunpack.c.h.s8.bf16 %v216_v20 }
  0x49   : > { %v2601_v23 = vld [vmem:[%s3249_s1 + $0x48] sm:$0xff]   ;;  %v2606_v28 = vld [vmem:[%s3250_s2 + $0x60] sm:$0xff]   ;;  %v2610_v32 = vld [vmem:[%s3250_s2 + $0x70] sm:$0xff]  }
  0x4a   : > { %647 = vmatprep.mubr.bf16.mxu1 %v296_v21  ;;  %1416 = vmatprep.mubr.bf16.mxu0 %v296_v21  ;;  %v2607_v29 = vld [vmem:[%s3249_s1 + $0x60] sm:$0xff]   ;;  %v2608_v30 = vld [vmem:[%s3250_s2 + $0x68] sm:$0xff]   ;;  %v2611_v33 = vld [vmem:[%s3249_s1 + $0x70] sm:$0xff]  }
  0x4b   : > { %620 = vmatpush1.bf16.msra.mxu1 %v2586_v6  ;;  %1389 = vmatpush1.bf16.msra.mxu0 %v2587_v7  ;;  %v2609_v31 = vld [vmem:[%s3249_s1 + $0x68] sm:$0xff]   ;;  %v2612_v34 = vld [vmem:[%s3250_s2 + $0x78] sm:$0xff]   ;;  %v215_v35 = vld [vmem:[%s2843_s27] sm:$0xff] }
  0x4c   : > { %621 = vmatprep.subr.bf16.mxu1 %v2716_v2  ;;  %1390 = vmatprep.subr.bf16.mxu0 %v2716_v2  ;;  %v2613_v36 = vld [vmem:[%s3249_s1 + $0x78] sm:$0xff]   ;;  %v295_v37 = vunpack.c.l.s8.bf16 %v215_v35  ;;  %v297_v40 = vunpack.c.h.s8.bf16 %v215_v35  ;;  %v217_v42 = vld [vmem:[%s2843_s27 + $0x10] sm:$0xff]  ;;  %v220_v45 = vld [vmem:[%s2843_s27 + $0x28] sm:$0xff] }
  0x4d   : > { %v218_v39 = vld [vmem:[%s2843_s27 + $0x18] sm:$0xff]  ;;  %v299_v43 = vunpack.c.l.s8.bf16 %v217_v42  ;;  %v301_v46 = vunpack.c.h.s8.bf16 %v217_v42  ;;  %v304_v47 = vunpack.c.l.s8.bf16 %v220_v45  ;;  %v219_v48 = vld [vmem:[%s2843_s27 + $0x20] sm:$0xff]  ;;  %v306_v50 = vunpack.c.h.s8.bf16 %v220_v45  ;;  %v221_v54 = vld [vmem:[%s2843_s27 + $0x30] sm:$0xff] }
  0x4e   : > { %v300_v41 = vunpack.c.l.s8.bf16 %v218_v39  ;;  %v302_v44 = vunpack.c.h.s8.bf16 %v218_v39  ;;  %v303_v49 = vunpack.c.l.s8.bf16 %v219_v48  ;;  %v222_v51 = vld [vmem:[%s2843_s27 + $0x38] sm:$0xff]  ;;  %v305_v52 = vunpack.c.h.s8.bf16 %v219_v48  ;;  %v224_v57 = vld [vmem:[%s2843_s27 + $0x48] sm:$0xff]  ;;  %v223_v60 = vld [vmem:[%s2843_s27 + $0x40] sm:$0xff] }
  0x4f   : > { %622 = vmatpush1.bf16.msra.mxu1 %v2588_v8  ;;  %1391 = vmatpush1.bf16.msra.mxu0 %v2589_v9  ;;  %v308_v53 = vunpack.c.l.s8.bf16 %v222_v51  ;;  %v307_v55 = vunpack.c.l.s8.bf16 %v221_v54  ;;  %v310_v56 = vunpack.c.h.s8.bf16 %v222_v51  ;;  %v309_v58 = vunpack.c.h.s8.bf16 %v221_v54  ;;  %v226_v63 = vld [vmem:[%s2843_s27 + $0x58] sm:$0xff]  ;;  %v228_v5 = vld [vmem:[%s2843_s27 + $0x68] sm:$0xff]  ;;  %v227_v8 = vld [vmem:[%s2843_s27 + $0x60] sm:$0xff] }
  0x50   : > { %623 = vmatprep.subr.bf16.mxu1 %v2716_v2  ;;  %1392 = vmatprep.subr.bf16.mxu0 %v2716_v2  ;;  %v312_v59 = vunpack.c.l.s8.bf16 %v224_v57  ;;  %v311_v61 = vunpack.c.l.s8.bf16 %v223_v60  ;;  %v314_v62 = vunpack.c.h.s8.bf16 %v224_v57  ;;  %v313_v0 = vunpack.c.h.s8.bf16 %v223_v60  ;;  %v231_v20 = vld [vmem:[%s2843_s27 + $0x80] sm:$0xff]  ;;  %v238_v35 = vld [vmem:[%s2843_s27 + $0xb8] sm:$0xff] }
  0x51   : > { %v316_v1 = vunpack.c.l.s8.bf16 %v226_v63  ;;  %v318_v4 = vunpack.c.h.s8.bf16 %v226_v63  ;;  %v320_v7 = vunpack.c.l.s8.bf16 %v228_v5  ;;  %v319_v9 = vunpack.c.l.s8.bf16 %v227_v8 }
  0x52   : > { %v327_v21 = vunpack.c.l.s8.bf16 %v231_v20 }
  0x53   : > { %624 = vmatpush1.bf16.msra.mxu1 %v2590_v10  ;;  %1393 = vmatpush1.bf16.msra.mxu0 %v2591_v11  ;;  %v322_v10 = vunpack.c.h.s8.bf16 %v228_v5  ;;  %v230_v11 = vld [vmem:[%s2843_s27 + $0x78] sm:$0xff] }
  0x54   : > { %625 = vmatprep.subr.bf16.mxu1 %v2716_v2  ;;  %1394 = vmatprep.subr.bf16.mxu0 %v2716_v2 }
  0x57   : > { %626 = vmatpush1.bf16.msra.mxu1 %v2592_v12  ;;  %1395 = vmatpush1.bf16.msra.mxu0 %v2593_v13  ;;  %v321_v12 = vunpack.c.h.s8.bf16 %v227_v8  ;;  %v324_v13 = vunpack.c.l.s8.bf16 %v230_v11 }
  0x58   : > { %627 = vmatprep.subr.bf16.mxu1 %v2716_v2  ;;  %1396 = vmatprep.subr.bf16.mxu0 %v2716_v2 }
  0x5b   : > { %628 = vmatpush1.bf16.msra.mxu1 %v2594_v14  ;;  %1397 = vmatpush1.bf16.msra.mxu0 %v2595_v15  ;;  %v229_v14 = vld [vmem:[%s2843_s27 + $0x70] sm:$0xff] }
  0x5c   : > { %629 = vmatprep.subr.bf16.mxu1 %v2716_v2  ;;  %1398 = vmatprep.subr.bf16.mxu0 %v2716_v2  ;;  %v323_v15 = vunpack.c.l.s8.bf16 %v229_v14 }
  0x5f   : > { %630 = vmatpush1.bf16.msra.mxu1 %v2596_v16  ;;  %1399 = vmatpush1.bf16.msra.mxu0 %v2597_v17  ;;  %v326_v16 = vunpack.c.h.s8.bf16 %v230_v11  ;;  %v232_v17 = vld [vmem:[%s2843_s27 + $0x88] sm:$0xff] }
  0x60   : > { %631 = vmatprep.subr.bf16.mxu1 %v2716_v2  ;;  %1400 = vmatprep.subr.bf16.mxu0 %v2716_v2 }
  0x63   : > { %632 = vmatpush1.bf16.msra.mxu1 %v2598_v18  ;;  %1401 = vmatpush1.bf16.msra.mxu0 %v2599_v19  ;;  %v325_v18 = vunpack.c.h.s8.bf16 %v229_v14  ;;  %v328_v19 = vunpack.c.l.s8.bf16 %v232_v17 }
  0x64   : > { %633 = vmatprep.subr.bf16.mxu1 %v2716_v2  ;;  %1402 = vmatprep.subr.bf16.mxu0 %v2716_v2 }
  0x67   : > { %634 = vmatpush1.bf16.msra.mxu1 %v2600_v22  ;;  %1403 = vmatpush1.bf16.msra.mxu0 %v2601_v23  ;;  %v330_v22 = vunpack.c.h.s8.bf16 %v232_v17  ;;  %v234_v23 = vld [vmem:[%s2843_s27 + $0x98] sm:$0xff] }
  0x68   : > { %635 = vmatprep.subr.bf16.mxu1 %v2716_v2  ;;  %1404 = vmatprep.subr.bf16.mxu0 %v2716_v2 }
  0x6b   : > { %636 = vmatpush1.bf16.msra.mxu1 %v2602_v24  ;;  %1405 = vmatpush1.bf16.msra.mxu0 %v2603_v25  ;;  %v329_v24 = vunpack.c.h.s8.bf16 %v231_v20  ;;  %v332_v25 = vunpack.c.l.s8.bf16 %v234_v23 }
  0x6c   : > { %637 = vmatprep.subr.bf16.mxu1 %v2716_v2  ;;  %1406 = vmatprep.subr.bf16.mxu0 %v2716_v2 }
  0x6f   : > { %638 = vmatpush1.bf16.msra.mxu1 %v2604_v26  ;;  %1407 = vmatpush1.bf16.msra.mxu0 %v2605_v27  ;;  %v233_v26 = vld [vmem:[%s2843_s27 + $0x90] sm:$0xff] }
  0x70   : > { %639 = vmatprep.subr.bf16.mxu1 %v2716_v2  ;;  %1408 = vmatprep.subr.bf16.mxu0 %v2716_v2  ;;  %v331_v27 = vunpack.c.l.s8.bf16 %v233_v26 }
  0x73   : > { %640 = vmatpush1.bf16.msra.mxu1 %v2606_v28  ;;  %1409 = vmatpush1.bf16.msra.mxu0 %v2607_v29  ;;  %v334_v28 = vunpack.c.h.s8.bf16 %v234_v23  ;;  %v236_v29 = vld [vmem:[%s2843_s27 + $0xa8] sm:$0xff] }
  0x74   : > { %641 = vmatprep.subr.bf16.mxu1 %v2716_v2  ;;  %1410 = vmatprep.subr.bf16.mxu0 %v2716_v2 }
  0x77   : > { %642 = vmatpush1.bf16.msra.mxu1 %v2608_v30  ;;  %1411 = vmatpush1.bf16.msra.mxu0 %v2609_v31  ;;  %v333_v30 = vunpack.c.h.s8.bf16 %v233_v26  ;;  %v336_v31 = vunpack.c.l.s8.bf16 %v236_v29 }
  0x78   : > { %643 = vmatprep.subr.bf16.mxu1 %v2716_v2  ;;  %1412 = vmatprep.subr.bf16.mxu0 %v2716_v2 }
  0x7b   : > { %644 = vmatpush1.bf16.msra.mxu1 %v2610_v32  ;;  %1413 = vmatpush1.bf16.msra.mxu0 %v2611_v33  ;;  %v235_v32 = vld [vmem:[%s2843_s27 + $0xa0] sm:$0xff] }
  0x7c   : > { %645 = vmatprep.subr.bf16.mxu1 %v2716_v2  ;;  %1414 = vmatprep.subr.bf16.mxu0 %v2716_v2  ;;  %v225_v2 = vld [vmem:[%s2843_s27 + $0x50] sm:$0xff]  ;;  %v335_v33 = vunpack.c.l.s8.bf16 %v235_v32 }
  0x7d   : > { %v315_v3 = vunpack.c.l.s8.bf16 %v225_v2  ;;  %v317_v6 = vunpack.c.h.s8.bf16 %v225_v2  ;;  %v243_v2 = vld [vmem:[%s2843_s27 + $0xe0] sm:$0xff] }
  0x7f   : > { %646 = vmatpush1.bf16.msra.mxu1 %v2612_v34  ;;  %1415 = vmatpush1.bf16.msra.mxu0 %v2613_v36  ;;  %v338_v34 = vunpack.c.h.s8.bf16 %v236_v29  ;;  %v337_v36 = vunpack.c.h.s8.bf16 %v235_v32 }
  0x82   : > { %648 = vmatmul.mubr.bf16.vlgmr.msra.gmra.mrb[0].mxu1 %v295_v37  ;;  %1417 = vmatmul.mubr.bf16.vlgmr.msra.gmra.mrb[0].mxu0 %v295_v37  ;;  %v340_v37 = vunpack.c.l.s8.bf16 %v238_v35 }
  0x83   : > { %655 = vmatprep.mubr.bf16.mxu1 %v298_v38  ;;  %1424 = vmatprep.mubr.bf16.mxu0 %v298_v38  ;;  %v237_v38 = vld [vmem:[%s2843_s27 + $0xb0] sm:$0xff] }
  0x84   : > { %v339_v39 = vunpack.c.l.s8.bf16 %v237_v38  ;;  %v341_v42 = vunpack.c.h.s8.bf16 %v237_v38 }
  0x8a   : > { %656 = vmatmul.mubr.bf16.gmra.mrb[4].mxu1 %v297_v40  ;;  %1425 = vmatmul.mubr.bf16.gmra.mrb[4].mxu0 %v297_v40  ;;  %v342_v40 = vunpack.c.h.s8.bf16 %v238_v35 }
  0x8b   : > { %663 = vmatprep.mubr.bf16.mxu1 %v300_v41  ;;  %1432 = vmatprep.mubr.bf16.mxu0 %v300_v41  ;;  %v240_v41 = vld [vmem:[%s2843_s27 + $0xc8] sm:$0xff] }
  0x92   : > { %664 = vmatmul.mubr.bf16.gmra.mrb[8].mxu1 %v299_v43  ;;  %1433 = vmatmul.mubr.bf16.gmra.mrb[8].mxu0 %v299_v43  ;;  %v344_v43 = vunpack.c.l.s8.bf16 %v240_v41 }
  0x93   : > { %671 = vmatprep.mubr.bf16.mxu1 %v302_v44  ;;  %1440 = vmatprep.mubr.bf16.mxu0 %v302_v44  ;;  %v239_v44 = vld [vmem:[%s2843_s27 + $0xc0] sm:$0xff] }
  0x94   : > { %v343_v45 = vunpack.c.l.s8.bf16 %v239_v44  ;;  %v345_v48 = vunpack.c.h.s8.bf16 %v239_v44 }
  0x9a   : > { %672 = vmatmul.mubr.bf16.gmra.mrb[12].mxu1 %v301_v46  ;;  %1441 = vmatmul.mubr.bf16.gmra.mrb[12].mxu0 %v301_v46  ;;  %v346_v46 = vunpack.c.h.s8.bf16 %v240_v41 }
  0x9b   : > { %679 = vmatprep.mubr.bf16.mxu1 %v304_v47  ;;  %1448 = vmatprep.mubr.bf16.mxu0 %v304_v47  ;;  %v242_v47 = vld [vmem:[%s2843_s27 + $0xd8] sm:$0xff] }
  0xa2   : > { %680 = vmatmul.mubr.bf16.gmra.mrb[16].mxu1 %v303_v49  ;;  %1449 = vmatmul.mubr.bf16.gmra.mrb[16].mxu0 %v303_v49  ;;  %v348_v49 = vunpack.c.l.s8.bf16 %v242_v47 }
  0xa3   : > { %687 = vmatprep.mubr.bf16.mxu1 %v306_v50  ;;  %1456 = vmatprep.mubr.bf16.mxu0 %v306_v50  ;;  %v241_v50 = vld [vmem:[%s2843_s27 + $0xd0] sm:$0xff] }
  0xa4   : > { %v347_v51 = vunpack.c.l.s8.bf16 %v241_v50  ;;  %v349_v57 = vunpack.c.h.s8.bf16 %v241_v50 }
  0xaa   : > { %688 = vmatmul.mubr.bf16.gmra.mrb[20].mxu1 %v305_v52  ;;  %1457 = vmatmul.mubr.bf16.gmra.mrb[20].mxu0 %v305_v52  ;;  %v350_v52 = vunpack.c.h.s8.bf16 %v242_v47 }
  0xab   : > { %695 = vmatprep.mubr.bf16.mxu1 %v308_v53  ;;  %1464 = vmatprep.mubr.bf16.mxu0 %v308_v53  ;;  %v244_v53 = vld [vmem:[%s2843_s27 + $0xe8] sm:$0xff] }
  0xb2   : > { %696 = vmatmul.mubr.bf16.gmra.mrb[24].mxu1 %v307_v55  ;;  %1465 = vmatmul.mubr.bf16.gmra.mrb[24].mxu0 %v307_v55 }
  0xb3   : > { %703 = vmatprep.mubr.bf16.mxu1 %v310_v56  ;;  %1472 = vmatprep.mubr.bf16.mxu0 %v310_v56 }
  0xba   : > { %704 = vmatmul.mubr.bf16.gmra.mrb[28].mxu1 %v309_v58  ;;  %1473 = vmatmul.mubr.bf16.gmra.mrb[28].mxu0 %v309_v58 }
  0xbb   : > { %711 = vmatprep.mubr.bf16.mxu1 %v312_v59  ;;  %1480 = vmatprep.mubr.bf16.mxu0 %v312_v59 }
  0xc2   : > { %712 = vmatmul.mubr.bf16.gmra.mrb[32].mxu1 %v311_v61  ;;  %1481 = vmatmul.mubr.bf16.gmra.mrb[32].mxu0 %v311_v61  ;;  %v352_v61 = vunpack.c.l.s8.bf16 %v244_v53 }
  0xc3   : > { %719 = vmatprep.mubr.bf16.mxu1 %v314_v62  ;;  %1488 = vmatprep.mubr.bf16.mxu0 %v314_v62 }
  0xca   : > { %720 = vmatmul.mubr.bf16.gmra.mrb[36].mxu1 %v313_v0  ;;  %1489 = vmatmul.mubr.bf16.gmra.mrb[36].mxu0 %v313_v0 }
  0xcb   : > { %727 = vmatprep.mubr.bf16.mxu1 %v316_v1  ;;  %1496 = vmatprep.mubr.bf16.mxu0 %v316_v1 }
  0xd2   : > { %728 = vmatmul.mubr.bf16.gmra.mrb[40].mxu1 %v315_v3  ;;  %1497 = vmatmul.mubr.bf16.gmra.mrb[40].mxu0 %v315_v3 }
  0xd3   : > { %735 = vmatprep.mubr.bf16.mxu1 %v318_v4  ;;  %1504 = vmatprep.mubr.bf16.mxu0 %v318_v4 }
  0xda   : > { %736 = vmatmul.mubr.bf16.gmra.mrb[44].mxu1 %v317_v6  ;;  %1505 = vmatmul.mubr.bf16.gmra.mrb[44].mxu0 %v317_v6  ;;  %v351_v6 = vunpack.c.l.s8.bf16 %v243_v2 }
  0xdb   : > { %743 = vmatprep.mubr.bf16.mxu1 %v320_v7  ;;  %1512 = vmatprep.mubr.bf16.mxu0 %v320_v7 }
  0xe2   : > { %744 = vmatmul.mubr.bf16.gmra.mrb[48].mxu1 %v319_v9  ;;  %1513 = vmatmul.mubr.bf16.gmra.mrb[48].mxu0 %v319_v9 }
  0xe3   : > { %751 = vmatprep.mubr.bf16.mxu1 %v322_v10  ;;  %1520 = vmatprep.mubr.bf16.mxu0 %v322_v10  ;;  %v354_v10 = vunpack.c.h.s8.bf16 %v244_v53 }
  0xea   : > { %752 = vmatmul.mubr.bf16.gmra.mrb[52].mxu1 %v321_v12  ;;  %1521 = vmatmul.mubr.bf16.gmra.mrb[52].mxu0 %v321_v12 }
  0xeb   : > { %759 = vmatprep.mubr.bf16.mxu1 %v324_v13  ;;  %1528 = vmatprep.mubr.bf16.mxu0 %v324_v13 }
  0xf2   : > { %760 = vmatmul.mubr.bf16.gmra.mrb[56].mxu1 %v323_v15  ;;  %1529 = vmatmul.mubr.bf16.gmra.mrb[56].mxu0 %v323_v15  ;;  %v246_v15 = vld [vmem:[%s2843_s27 + $0xf8] sm:$0xff] }
  0xf3   : > { %767 = vmatprep.mubr.bf16.mxu1 %v326_v16  ;;  %1536 = vmatprep.mubr.bf16.mxu0 %v326_v16  ;;  %v356_v23 = vunpack.c.l.s8.bf16 %v246_v15  ;;  %v358_v38 = vunpack.c.h.s8.bf16 %v246_v15 }
  0xfa   : > { %768 = vmatmul.mubr.bf16.gmra.mrb[60].mxu1 %v325_v18  ;;  %1537 = vmatmul.mubr.bf16.gmra.mrb[60].mxu0 %v325_v18 }
  0xfb   : > { %775 = vmatprep.mubr.bf16.mxu1 %v328_v19  ;;  %1544 = vmatprep.mubr.bf16.mxu0 %v328_v19  ;;  %v353_v19 = vunpack.c.h.s8.bf16 %v243_v2 }
 0x102   : > { %776 = vmatmul.mubr.bf16.gmra.mrb[64].mxu1 %v327_v21  ;;  %1545 = vmatmul.mubr.bf16.gmra.mrb[64].mxu0 %v327_v21 }
 0x103   : > { %783 = vmatprep.mubr.bf16.mxu1 %v330_v22  ;;  %1552 = vmatprep.mubr.bf16.mxu0 %v330_v22 }
 0x10a   : > { %784 = vmatmul.mubr.bf16.gmra.mrb[68].mxu1 %v329_v24  ;;  %1553 = vmatmul.mubr.bf16.gmra.mrb[68].mxu0 %v329_v24 }
 0x10b   : > { %791 = vmatprep.mubr.bf16.mxu1 %v332_v25  ;;  %1560 = vmatprep.mubr.bf16.mxu0 %v332_v25 }
 0x112   : > { %792 = vmatmul.mubr.bf16.gmra.mrb[72].mxu1 %v331_v27  ;;  %1561 = vmatmul.mubr.bf16.gmra.mrb[72].mxu0 %v331_v27 }
 0x113   : > { %799 = vmatprep.mubr.bf16.mxu1 %v334_v28  ;;  %1568 = vmatprep.mubr.bf16.mxu0 %v334_v28 }
 0x11a   : > { %800 = vmatmul.mubr.bf16.gmra.mrb[76].mxu1 %v333_v30  ;;  %1569 = vmatmul.mubr.bf16.gmra.mrb[76].mxu0 %v333_v30  ;;  %v245_v30 = vld [vmem:[%s2843_s27 + $0xf0] sm:$0xff] }
 0x11b   : > { %807 = vmatprep.mubr.bf16.mxu1 %v336_v31  ;;  %1576 = vmatprep.mubr.bf16.mxu0 %v336_v31 }
 0x122   : > { %808 = vmatmul.mubr.bf16.gmra.mrb[80].mxu1 %v335_v33  ;;  %1577 = vmatmul.mubr.bf16.gmra.mrb[80].mxu0 %v335_v33 }
 0x123   : > { %815 = vmatprep.mubr.bf16.mxu1 %v338_v34  ;;  %1584 = vmatprep.mubr.bf16.mxu0 %v338_v34  ;;  %v355_v34 = vunpack.c.l.s8.bf16 %v245_v30 }
 0x12a   : > { %816 = vmatmul.mubr.bf16.gmra.mrb[84].mxu1 %v337_v36  ;;  %1585 = vmatmul.mubr.bf16.gmra.mrb[84].mxu0 %v337_v36 }
 0x12b   : > { %823 = vmatprep.mubr.bf16.mxu1 %v340_v37  ;;  %1592 = vmatprep.mubr.bf16.mxu0 %v340_v37 }
 0x132   : > { %824 = vmatmul.mubr.bf16.gmra.mrb[88].mxu1 %v339_v39  ;;  %1593 = vmatmul.mubr.bf16.gmra.mrb[88].mxu0 %v339_v39 }
 0x133   : > { %831 = vmatprep.mubr.bf16.mxu1 %v342_v40  ;;  %1600 = vmatprep.mubr.bf16.mxu0 %v342_v40 }
 0x13a   : > { %832 = vmatmul.mubr.bf16.gmra.mrb[92].mxu1 %v341_v42  ;;  %1601 = vmatmul.mubr.bf16.gmra.mrb[92].mxu0 %v341_v42 }
 0x13b   : > { %839 = vmatprep.mubr.bf16.mxu1 %v344_v43  ;;  %1608 = vmatprep.mubr.bf16.mxu0 %v344_v43 }
 0x142   : > { %840 = vmatmul.mubr.bf16.gmra.mrb[96].mxu1 %v343_v45  ;;  %1609 = vmatmul.mubr.bf16.gmra.mrb[96].mxu0 %v343_v45  ;;  %v248_v45 = vld [vmem:[%s2843_s27 + $0x108] sm:$0xff] }
 0x143   : > { %847 = vmatprep.mubr.bf16.mxu1 %v346_v46  ;;  %1616 = vmatprep.mubr.bf16.mxu0 %v346_v46  ;;  %v360_v53 = vunpack.c.l.s8.bf16 %v248_v45 }
 0x14a   : > { %848 = vmatmul.mubr.bf16.gmra.mrb[100].mxu1 %v345_v48  ;;  %1617 = vmatmul.mubr.bf16.gmra.mrb[100].mxu0 %v345_v48 }
 0x14b   : > { %855 = vmatprep.mubr.bf16.mxu1 %v348_v49  ;;  %1624 = vmatprep.mubr.bf16.mxu0 %v348_v49  ;;  %v357_v49 = vunpack.c.h.s8.bf16 %v245_v30 }
 0x152   : > { %856 = vmatmul.mubr.bf16.gmra.mrb[104].mxu1 %v347_v51  ;;  %1625 = vmatmul.mubr.bf16.gmra.mrb[104].mxu0 %v347_v51 }
 0x153   : > { %863 = vmatprep.mubr.bf16.mxu1 %v350_v52  ;;  %1632 = vmatprep.mubr.bf16.mxu0 %v350_v52 }
 0x155   : > { %v649_v54 = vpop.f32.mrb[0].mxu1  ;;  %v1418_v55 = vpop.f32.mrb[0].mxu0 }
 0x156   : > { %v651_v56 = vpop.f32.mrb[1].mxu1  ;;  %v3015_v58 = vadd.f32 %v1418_v55, %v649_v54  ;;  %v1420_v59 = vpop.f32.mrb[1].mxu0 }
 0x157   : > { %v652_v60 = vpop.f32.mrb[2].mxu1  ;;  %v1421_v62 = vpop.f32.mrb[2].mxu0 }
 0x158   : > { %v654_v63 = vpop.f32.mrb[3].mxu1  ;;  %v3017_v0 = vadd.f32 %v1421_v62, %v652_v60  ;;  %v1423_v1 = vpop.f32.mrb[3].mxu0  ;;  %v247_v60 = vld [vmem:[%s2843_s27 + $0x100] sm:$0xff] }
 0x159   : > { %v361_v15 = vunpack.c.h.s8.bf16 %v247_v60 }
 0x15a   : > { %864 = vmatmul.mubr.bf16.gmra.mrb[108].mxu1 %v349_v57  ;;  %1633 = vmatmul.mubr.bf16.gmra.mrb[108].mxu0 %v349_v57 }
 0x15b   : > { %871 = vmatprep.mubr.bf16.mxu1 %v352_v61  ;;  %1640 = vmatprep.mubr.bf16.mxu0 %v352_v61 }
 0x15d   : > { %v657_v3 = vpop.f32.mrb[4].mxu1  ;;  %v1426_v4 = vpop.f32.mrb[4].mxu0 }
 0x15e   : > { %v659_v5 = vpop.f32.mrb[5].mxu1  ;;  %v3020_v7 = vadd.f32 %v1426_v4, %v657_v3  ;;  %v1428_v8 = vpop.f32.mrb[5].mxu0  ;;  %v362_v4 = vunpack.c.h.s8.bf16 %v248_v45 }
 0x15f   : > { %v660_v9 = vpop.f32.mrb[6].mxu1  ;;  %v1429_v11 = vpop.f32.mrb[6].mxu0 }
 0x160   : > { %v662_v12 = vpop.f32.mrb[7].mxu1  ;;  %v3022_v13 = vadd.f32 %v1429_v11, %v660_v9  ;;  %v1431_v14 = vpop.f32.mrb[7].mxu0  ;;  %v250_v11 = vld [vmem:[%s2843_s27 + $0x118] sm:$0xff] }
 0x162   : > { %872 = vmatmul.mubr.bf16.gmra.mrb[112].mxu1 %v351_v6  ;;  %1641 = vmatmul.mubr.bf16.gmra.mrb[112].mxu0 %v351_v6 }
 0x163   : > { %879 = vmatprep.mubr.bf16.mxu1 %v354_v10  ;;  %1648 = vmatprep.mubr.bf16.mxu0 %v354_v10 }
 0x165   : > { %v665_v16 = vpop.f32.mrb[8].mxu1  ;;  %v1434_v17 = vpop.f32.mrb[8].mxu0 }
 0x166   : > { %v667_v18 = vpop.f32.mrb[9].mxu1  ;;  %v1435_v20 = vadd.f32 %v1434_v17, %v665_v16  ;;  %v1436_v21 = vpop.f32.mrb[9].mxu0 }
 0x167   : > { %v668_v22 = vpop.f32.mrb[10].mxu1  ;;  %v1437_v24 = vpop.f32.mrb[10].mxu0 }
 0x168   : > { %v670_v25 = vpop.f32.mrb[11].mxu1  ;;  %v2057_v26 = vmin.f32 %v3015_v58, %v1435_v20  ;;  %v1438_v27 = vadd.f32 %v1437_v24, %v668_v22  ;;  %v1439_v28 = vpop.f32.mrb[11].mxu0 }
 0x16a   : > { %880 = vmatmul.mubr.bf16.gmra.mrb[116].mxu1 %v353_v19  ;;  %v2058_v29 = vmin.f32 %v3017_v0, %v1438_v27  ;;  %1649 = vmatmul.mubr.bf16.gmra.mrb[116].mxu0 %v353_v19  ;;  %v359_v0 = vunpack.c.l.s8.bf16 %v247_v60  ;;  %v364_v19 = vunpack.c.l.s8.bf16 %v250_v11 }
 0x16b   : > { %887 = vmatprep.mubr.bf16.mxu1 %v356_v23  ;;  %1656 = vmatprep.mubr.bf16.mxu0 %v356_v23 }
 0x16d   : > { %v673_v31 = vpop.f32.mrb[12].mxu1  ;;  %v1442_v32 = vpop.f32.mrb[12].mxu0 }
 0x16e   : > { %v675_v33 = vpop.f32.mrb[13].mxu1  ;;  %v1443_v35 = vadd.f32 %v1442_v32, %v673_v31  ;;  %v1444_v36 = vpop.f32.mrb[13].mxu0 }
 0x16f   : > { %v676_v37 = vpop.f32.mrb[14].mxu1  ;;  %v1445_v39 = vpop.f32.mrb[14].mxu0 }
 0x170   : > { %v678_v40 = vpop.f32.mrb[15].mxu1  ;;  %v2059_v41 = vmin.f32 %v3020_v7, %v1443_v35  ;;  %v1446_v42 = vadd.f32 %v1445_v39, %v676_v37  ;;  %v1447_v43 = vpop.f32.mrb[15].mxu0 }
 0x172   : > { %888 = vmatmul.mubr.bf16.gmra.mrb[120].mxu1 %v355_v34  ;;  %v2060_v44 = vmin.f32 %v3022_v13, %v1446_v42  ;;  %1657 = vmatmul.mubr.bf16.gmra.mrb[120].mxu0 %v355_v34  ;;  %v366_v34 = vunpack.c.h.s8.bf16 %v250_v11 }
 0x173   : > { %895 = vmatprep.mubr.bf16.mxu1 %v358_v38  ;;  %1664 = vmatprep.mubr.bf16.mxu0 %v358_v38 }
 0x175   : > { %v681_v46 = vpop.f32.mrb[16].mxu1  ;;  %v1450_v47 = vpop.f32.mrb[16].mxu0 }
 0x176   : > { %v683_v48 = vpop.f32.mrb[17].mxu1  ;;  %v1451_v50 = vadd.f32 %v1450_v47, %v681_v46  ;;  %v1452_v51 = vpop.f32.mrb[17].mxu0 }
 0x177   : > { %v684_v52 = vpop.f32.mrb[18].mxu1  ;;  %v1453_v54 = vpop.f32.mrb[18].mxu0 }
 0x178   : > { %v686_v55 = vpop.f32.mrb[19].mxu1  ;;  %v3031_v56 = vmin.f32 %v2057_v26, %v1451_v50  ;;  %v1454_v57 = vadd.f32 %v1453_v54, %v684_v52  ;;  %v1455_v58 = vpop.f32.mrb[19].mxu0  ;;  %v249_v26 = vld [vmem:[%s2843_s27 + $0x110] sm:$0xff] }
 0x179   : > { %v363_v30 = vunpack.c.l.s8.bf16 %v249_v26  ;;  %v365_v45 = vunpack.c.h.s8.bf16 %v249_v26 }
 0x17a   : > { %896 = vmatmul.mubr.bf16.gmra.mrb[124].mxu1 %v357_v49  ;;  %v3033_v59 = vmin.f32 %v2058_v29, %v1454_v57  ;;  %1665 = vmatmul.mubr.bf16.gmra.mrb[124].mxu0 %v357_v49 }
 0x17b   : > { %903 = vmatprep.mubr.bf16.mxu1 %v360_v53  ;;  %1672 = vmatprep.mubr.bf16.mxu0 %v360_v53 }
 0x17d   : > { %v689_v61 = vpop.f32.mrb[20].mxu1  ;;  %v1458_v62 = vpop.f32.mrb[20].mxu0 }
 0x17e   : > { %v691_v63 = vpop.f32.mrb[21].mxu1  ;;  %v1459_v1 = vadd.f32 %v1458_v62, %v689_v61  ;;  %v1460_v2 = vpop.f32.mrb[21].mxu0 }
 0x17f   : > { %v692_v3 = vpop.f32.mrb[22].mxu1  ;;  %v1461_v5 = vpop.f32.mrb[22].mxu0 }
 0x180   : > { %v694_v6 = vpop.f32.mrb[23].mxu1  ;;  %v3036_v7 = vmin.f32 %v2059_v41, %v1459_v1  ;;  %v1462_v8 = vadd.f32 %v1461_v5, %v692_v3  ;;  %v1463_v9 = vpop.f32.mrb[23].mxu0  ;;  %v252_v41 = vld [vmem:[%s2843_s27 + $0x128] sm:$0xff] }
 0x181   : > { %v368_v49 = vunpack.c.l.s8.bf16 %v252_v41 }
 0x182   : > { %904 = vmatmul.mubr.bf16.gmra.mrb[128].mxu1 %v359_v0  ;;  %v3038_v10 = vmin.f32 %v2060_v44, %v1462_v8  ;;  %1673 = vmatmul.mubr.bf16.gmra.mrb[128].mxu0 %v359_v0  ;;  %v370_v0 = vunpack.c.h.s8.bf16 %v252_v41 }
 0x183   : > { %911 = vmatprep.mubr.bf16.mxu1 %v362_v4  ;;  %1680 = vmatprep.mubr.bf16.mxu0 %v362_v4 }
 0x185   : > { %v697_v12 = vpop.f32.mrb[24].mxu1  ;;  %v1466_v13 = vpop.f32.mrb[24].mxu0 }
 0x186   : > { %v699_v14 = vpop.f32.mrb[25].mxu1  ;;  %v1467_v16 = vadd.f32 %v1466_v13, %v697_v12  ;;  %v1468_v17 = vpop.f32.mrb[25].mxu0 }
 0x187   : > { %v700_v18 = vpop.f32.mrb[26].mxu1  ;;  %v1469_v20 = vpop.f32.mrb[26].mxu0 }
 0x188   : > { %v702_v21 = vpop.f32.mrb[27].mxu1  ;;  %v2065_v22 = vmin.f32 %v3031_v56, %v1467_v16  ;;  %v1470_v23 = vadd.f32 %v1469_v20, %v700_v18  ;;  %v1471_v24 = vpop.f32.mrb[27].mxu0  ;;  %v251_v56 = vld [vmem:[%s2843_s27 + $0x120] sm:$0xff] }
 0x189   : > { %v367_v60 = vunpack.c.l.s8.bf16 %v251_v56  ;;  %v369_v11 = vunpack.c.h.s8.bf16 %v251_v56 }
 0x18a   : > { %912 = vmatmul.mubr.bf16.gmra.mrb[132].mxu1 %v361_v15  ;;  %v2066_v25 = vmin.f32 %v3033_v59, %v1470_v23  ;;  %1681 = vmatmul.mubr.bf16.gmra.mrb[132].mxu0 %v361_v15 }
 0x18b   : > { %919 = vmatprep.mubr.bf16.mxu1 %v364_v19  ;;  %1688 = vmatprep.mubr.bf16.mxu0 %v364_v19 }
 0x18d   : > { %v705_v27 = vpop.f32.mrb[28].mxu1  ;;  %v1474_v28 = vpop.f32.mrb[28].mxu0 }
 0x18e   : > { %v707_v29 = vpop.f32.mrb[29].mxu1  ;;  %v1475_v31 = vadd.f32 %v1474_v28, %v705_v27  ;;  %v1476_v32 = vpop.f32.mrb[29].mxu0 }
 0x18f   : > { %v708_v33 = vpop.f32.mrb[30].mxu1  ;;  %v1477_v35 = vpop.f32.mrb[30].mxu0 }
 0x190   : > { %v710_v36 = vpop.f32.mrb[31].mxu1  ;;  %v2067_v37 = vmin.f32 %v3036_v7, %v1475_v31  ;;  %v1478_v38 = vadd.f32 %v1477_v35, %v708_v33  ;;  %v1479_v39 = vpop.f32.mrb[31].mxu0  ;;  %v254_v7 = vld [vmem:[%s2843_s27 + $0x138] sm:$0xff] }
 0x191   : > { %v372_v15 = vunpack.c.l.s8.bf16 %v254_v7 }
 0x192   : > { %920 = vmatmul.mubr.bf16.gmra.mrb[136].mxu1 %v363_v30  ;;  %v2068_v40 = vmin.f32 %v3038_v10, %v1478_v38  ;;  %1689 = vmatmul.mubr.bf16.gmra.mrb[136].mxu0 %v363_v30  ;;  %v374_v30 = vunpack.c.h.s8.bf16 %v254_v7 }
 0x193   : > { %927 = vmatprep.mubr.bf16.mxu1 %v366_v34  ;;  %1696 = vmatprep.mubr.bf16.mxu0 %v366_v34 }
 0x195   : > { %v713_v42 = vpop.f32.mrb[32].mxu1  ;;  %v1482_v43 = vpop.f32.mrb[32].mxu0 }
 0x196   : > { %v715_v44 = vpop.f32.mrb[33].mxu1  ;;  %v1483_v46 = vadd.f32 %v1482_v43, %v713_v42  ;;  %v1484_v47 = vpop.f32.mrb[33].mxu0 }
 0x197   : > { %v716_v48 = vpop.f32.mrb[34].mxu1  ;;  %v1485_v50 = vpop.f32.mrb[34].mxu0 }
 0x198   : > { %v718_v51 = vpop.f32.mrb[35].mxu1  ;;  %v3047_v52 = vmin.f32 %v2065_v22, %v1483_v46  ;;  %v1486_v53 = vadd.f32 %v1485_v50, %v716_v48  ;;  %v1487_v54 = vpop.f32.mrb[35].mxu0  ;;  %v253_v22 = vld [vmem:[%s2843_s27 + $0x130] sm:$0xff] }
 0x199   : > { %v371_v26 = vunpack.c.l.s8.bf16 %v253_v22  ;;  %v373_v41 = vunpack.c.h.s8.bf16 %v253_v22 }
 0x19a   : > { %928 = vmatmul.mubr.bf16.gmra.mrb[140].mxu1 %v365_v45  ;;  %v3049_v55 = vmin.f32 %v2066_v25, %v1486_v53  ;;  %1697 = vmatmul.mubr.bf16.gmra.mrb[140].mxu0 %v365_v45 }
 0x19b   : > { %935 = vmatprep.mubr.bf16.mxu1 %v368_v49  ;;  %1704 = vmatprep.mubr.bf16.mxu0 %v368_v49 }
 0x19d   : > { %v721_v57 = vpop.f32.mrb[36].mxu1  ;;  %v1490_v58 = vpop.f32.mrb[36].mxu0 }
 0x19e   : > { %v723_v59 = vpop.f32.mrb[37].mxu1  ;;  %v1491_v61 = vadd.f32 %v1490_v58, %v721_v57  ;;  %v1492_v62 = vpop.f32.mrb[37].mxu0 }
 0x19f   : > { %v724_v63 = vpop.f32.mrb[38].mxu1  ;;  %v1493_v1 = vpop.f32.mrb[38].mxu0 }
 0x1a0   : > { %v726_v2 = vpop.f32.mrb[39].mxu1  ;;  %v3052_v3 = vmin.f32 %v2067_v37, %v1491_v61  ;;  %v1494_v4 = vadd.f32 %v1493_v1, %v724_v63  ;;  %v1495_v5 = vpop.f32.mrb[39].mxu0  ;;  %v256_v37 = vld [vmem:[%s2843_s27 + $0x148] sm:$0xff] }
 0x1a1   : > { %v376_v45 = vunpack.c.l.s8.bf16 %v256_v37 }
 0x1a2   : > { %936 = vmatmul.mubr.bf16.gmra.mrb[144].mxu1 %v367_v60  ;;  %v3054_v6 = vmin.f32 %v2068_v40, %v1494_v4  ;;  %1705 = vmatmul.mubr.bf16.gmra.mrb[144].mxu0 %v367_v60  ;;  %v378_v60 = vunpack.c.h.s8.bf16 %v256_v37 }
 0x1a3   : > { %943 = vmatprep.mubr.bf16.mxu1 %v370_v0  ;;  %1712 = vmatprep.mubr.bf16.mxu0 %v370_v0 }
 0x1a5   : > { %v729_v8 = vpop.f32.mrb[40].mxu1  ;;  %v1498_v9 = vpop.f32.mrb[40].mxu0 }
 0x1a6   : > { %v731_v10 = vpop.f32.mrb[41].mxu1  ;;  %v1499_v12 = vadd.f32 %v1498_v9, %v729_v8  ;;  %v1500_v13 = vpop.f32.mrb[41].mxu0 }
 0x1a7   : > { %v732_v14 = vpop.f32.mrb[42].mxu1  ;;  %v1501_v16 = vpop.f32.mrb[42].mxu0 }
 0x1a8   : > { %v734_v17 = vpop.f32.mrb[43].mxu1  ;;  %v2073_v18 = vmin.f32 %v3047_v52, %v1499_v12  ;;  %v1502_v19 = vadd.f32 %v1501_v16, %v732_v14  ;;  %v1503_v20 = vpop.f32.mrb[43].mxu0  ;;  %v255_v52 = vld [vmem:[%s2843_s27 + $0x140] sm:$0xff] }
 0x1a9   : > { %v375_v56 = vunpack.c.l.s8.bf16 %v255_v52  ;;  %v377_v7 = vunpack.c.h.s8.bf16 %v255_v52 }
 0x1aa   : > { %944 = vmatmul.mubr.bf16.gmra.mrb[148].mxu1 %v369_v11  ;;  %v2074_v21 = vmin.f32 %v3049_v55, %v1502_v19  ;;  %1713 = vmatmul.mubr.bf16.gmra.mrb[148].mxu0 %v369_v11 }
 0x1ab   : > { %951 = vmatprep.mubr.bf16.mxu1 %v372_v15  ;;  %1720 = vmatprep.mubr.bf16.mxu0 %v372_v15 }
 0x1ad   : > { %v737_v23 = vpop.f32.mrb[44].mxu1  ;;  %v1506_v24 = vpop.f32.mrb[44].mxu0 }
 0x1ae   : > { %v739_v25 = vpop.f32.mrb[45].mxu1  ;;  %v1507_v27 = vadd.f32 %v1506_v24, %v737_v23  ;;  %v1508_v28 = vpop.f32.mrb[45].mxu0 }
 0x1af   : > { %v740_v29 = vpop.f32.mrb[46].mxu1  ;;  %v1509_v31 = vpop.f32.mrb[46].mxu0 }
 0x1b0   : > { %v742_v32 = vpop.f32.mrb[47].mxu1  ;;  %v2075_v33 = vmin.f32 %v3052_v3, %v1507_v27  ;;  %v1510_v34 = vadd.f32 %v1509_v31, %v740_v29  ;;  %v1511_v35 = vpop.f32.mrb[47].mxu0  ;;  %v258_v3 = vld [vmem:[%s2843_s27 + $0x158] sm:$0xff] }
 0x1b1   : > { %v380_v11 = vunpack.c.l.s8.bf16 %v258_v3 }
 0x1b2   : > { %952 = vmatmul.mubr.bf16.gmra.mrb[152].mxu1 %v371_v26  ;;  %v2076_v36 = vmin.f32 %v3054_v6, %v1510_v34  ;;  %1721 = vmatmul.mubr.bf16.gmra.mrb[152].mxu0 %v371_v26  ;;  %v382_v26 = vunpack.c.h.s8.bf16 %v258_v3 }
 0x1b3   : > { %959 = vmatprep.mubr.bf16.mxu1 %v374_v30  ;;  %1728 = vmatprep.mubr.bf16.mxu0 %v374_v30 }
 0x1b5   : > { %v745_v38 = vpop.f32.mrb[48].mxu1  ;;  %v1514_v39 = vpop.f32.mrb[48].mxu0 }
 0x1b6   : > { %v747_v40 = vpop.f32.mrb[49].mxu1  ;;  %v1515_v42 = vadd.f32 %v1514_v39, %v745_v38  ;;  %v1516_v43 = vpop.f32.mrb[49].mxu0 }
 0x1b7   : > { %v748_v44 = vpop.f32.mrb[50].mxu1  ;;  %v1517_v46 = vpop.f32.mrb[50].mxu0 }
 0x1b8   : > { %v750_v47 = vpop.f32.mrb[51].mxu1  ;;  %v3063_v48 = vmin.f32 %v2073_v18, %v1515_v42  ;;  %v1518_v49 = vadd.f32 %v1517_v46, %v748_v44  ;;  %v1519_v50 = vpop.f32.mrb[51].mxu0  ;;  %v257_v18 = vld [vmem:[%s2843_s27 + $0x150] sm:$0xff] }
 0x1b9   : > { %v379_v22 = vunpack.c.l.s8.bf16 %v257_v18  ;;  %v381_v37 = vunpack.c.h.s8.bf16 %v257_v18 }
 0x1ba   : > { %960 = vmatmul.mubr.bf16.gmra.mrb[156].mxu1 %v373_v41  ;;  %v3065_v51 = vmin.f32 %v2074_v21, %v1518_v49  ;;  %1729 = vmatmul.mubr.bf16.gmra.mrb[156].mxu0 %v373_v41 }
 0x1bb   : > { %967 = vmatprep.mubr.bf16.mxu1 %v376_v45  ;;  %1736 = vmatprep.mubr.bf16.mxu0 %v376_v45 }
 0x1bd   : > { %v753_v53 = vpop.f32.mrb[52].mxu1  ;;  %v1522_v54 = vpop.f32.mrb[52].mxu0 }
 0x1be   : > { %v755_v55 = vpop.f32.mrb[53].mxu1  ;;  %v1523_v57 = vadd.f32 %v1522_v54, %v753_v53  ;;  %v1524_v58 = vpop.f32.mrb[53].mxu0 }
 0x1bf   : > { %v756_v59 = vpop.f32.mrb[54].mxu1  ;;  %v1525_v61 = vpop.f32.mrb[54].mxu0 }
 0x1c0   : > { %v758_v62 = vpop.f32.mrb[55].mxu1  ;;  %v3068_v63 = vmin.f32 %v2075_v33, %v1523_v57  ;;  %v1526_v0 = vadd.f32 %v1525_v61, %v756_v59  ;;  %v1527_v1 = vpop.f32.mrb[55].mxu0  ;;  %v260_v33 = vld [vmem:[%s2843_s27 + $0x168] sm:$0xff] }
 0x1c1   : > { %v384_v41 = vunpack.c.l.s8.bf16 %v260_v33 }
 0x1c2   : > { %968 = vmatmul.mubr.bf16.gmra.mrb[160].mxu1 %v375_v56  ;;  %v3070_v2 = vmin.f32 %v2076_v36, %v1526_v0  ;;  %1737 = vmatmul.mubr.bf16.gmra.mrb[160].mxu0 %v375_v56  ;;  %v386_v56 = vunpack.c.h.s8.bf16 %v260_v33 }
 0x1c3   : > { %975 = vmatprep.mubr.bf16.mxu1 %v378_v60  ;;  %1744 = vmatprep.mubr.bf16.mxu0 %v378_v60 }
 0x1c5   : > { %v761_v4 = vpop.f32.mrb[56].mxu1  ;;  %v1530_v5 = vpop.f32.mrb[56].mxu0 }
 0x1c6   : > { %v763_v6 = vpop.f32.mrb[57].mxu1  ;;  %v1531_v8 = vadd.f32 %v1530_v5, %v761_v4  ;;  %v1532_v9 = vpop.f32.mrb[57].mxu0 }
 0x1c7   : > { %v764_v10 = vpop.f32.mrb[58].mxu1  ;;  %v1533_v12 = vpop.f32.mrb[58].mxu0 }
 0x1c8   : > { %v766_v13 = vpop.f32.mrb[59].mxu1  ;;  %v2081_v14 = vmin.f32 %v3063_v48, %v1531_v8  ;;  %v1534_v15 = vadd.f32 %v1533_v12, %v764_v10  ;;  %v1535_v16 = vpop.f32.mrb[59].mxu0  ;;  %v259_v48 = vld [vmem:[%s2843_s27 + $0x160] sm:$0xff] }
 0x1c9   : > { %v383_v52 = vunpack.c.l.s8.bf16 %v259_v48  ;;  %v385_v3 = vunpack.c.h.s8.bf16 %v259_v48 }
 0x1ca   : > { %976 = vmatmul.mubr.bf16.gmra.mrb[164].mxu1 %v377_v7  ;;  %v2082_v17 = vmin.f32 %v3065_v51, %v1534_v15  ;;  %1745 = vmatmul.mubr.bf16.gmra.mrb[164].mxu0 %v377_v7 }
 0x1cb   : > { %983 = vmatprep.mubr.bf16.mxu1 %v380_v11  ;;  %1752 = vmatprep.mubr.bf16.mxu0 %v380_v11 }
 0x1cd   : > { %v769_v19 = vpop.f32.mrb[60].mxu1  ;;  %v1538_v20 = vpop.f32.mrb[60].mxu0 }
 0x1ce   : > { %v771_v21 = vpop.f32.mrb[61].mxu1  ;;  %v1539_v23 = vadd.f32 %v1538_v20, %v769_v19  ;;  %v1540_v24 = vpop.f32.mrb[61].mxu0 }
 0x1cf   : > { %v772_v25 = vpop.f32.mrb[62].mxu1  ;;  %v1541_v27 = vpop.f32.mrb[62].mxu0 }
 0x1d0   : > { %v774_v28 = vpop.f32.mrb[63].mxu1  ;;  %v2083_v29 = vmin.f32 %v3068_v63, %v1539_v23  ;;  %v1542_v30 = vadd.f32 %v1541_v27, %v772_v25  ;;  %v1543_v31 = vpop.f32.mrb[63].mxu0  ;;  %v262_v63 = vld [vmem:[%s2843_s27 + $0x178] sm:$0xff] }
 0x1d1   : > { %v388_v7 = vunpack.c.l.s8.bf16 %v262_v63 }
 0x1d2   : > { %984 = vmatmul.mubr.bf16.gmra.mrb[168].mxu1 %v379_v22  ;;  %v2084_v32 = vmin.f32 %v3070_v2, %v1542_v30  ;;  %1753 = vmatmul.mubr.bf16.gmra.mrb[168].mxu0 %v379_v22  ;;  %v390_v22 = vunpack.c.h.s8.bf16 %v262_v63 }
 0x1d3   : > { %991 = vmatprep.mubr.bf16.mxu1 %v382_v26  ;;  %1760 = vmatprep.mubr.bf16.mxu0 %v382_v26 }
 0x1d5   : > { %v777_v34 = vpop.f32.mrb[64].mxu1  ;;  %v1546_v35 = vpop.f32.mrb[64].mxu0 }
 0x1d6   : > { %v779_v36 = vpop.f32.mrb[65].mxu1  ;;  %v1547_v38 = vadd.f32 %v1546_v35, %v777_v34  ;;  %v1548_v39 = vpop.f32.mrb[65].mxu0 }
 0x1d7   : > { %v780_v40 = vpop.f32.mrb[66].mxu1  ;;  %v1549_v42 = vpop.f32.mrb[66].mxu0 }
 0x1d8   : > { %v782_v43 = vpop.f32.mrb[67].mxu1  ;;  %v3079_v44 = vmin.f32 %v2081_v14, %v1547_v38  ;;  %v1550_v45 = vadd.f32 %v1549_v42, %v780_v40  ;;  %v1551_v46 = vpop.f32.mrb[67].mxu0  ;;  %v261_v14 = vld [vmem:[%s2843_s27 + $0x170] sm:$0xff] }
 0x1d9   : > { %v387_v18 = vunpack.c.l.s8.bf16 %v261_v14  ;;  %v389_v33 = vunpack.c.h.s8.bf16 %v261_v14 }
 0x1da   : > { %992 = vmatmul.mubr.bf16.gmra.mrb[172].mxu1 %v381_v37  ;;  %v3081_v47 = vmin.f32 %v2082_v17, %v1550_v45  ;;  %1761 = vmatmul.mubr.bf16.gmra.mrb[172].mxu0 %v381_v37 }
 0x1db   : > { %999 = vmatprep.mubr.bf16.mxu1 %v384_v41  ;;  %1768 = vmatprep.mubr.bf16.mxu0 %v384_v41 }
 0x1dd   : > { %v785_v49 = vpop.f32.mrb[68].mxu1  ;;  %v1554_v50 = vpop.f32.mrb[68].mxu0 }
 0x1de   : > { %v787_v51 = vpop.f32.mrb[69].mxu1  ;;  %v1555_v53 = vadd.f32 %v1554_v50, %v785_v49  ;;  %v1556_v54 = vpop.f32.mrb[69].mxu0 }
 0x1df   : > { %v788_v55 = vpop.f32.mrb[70].mxu1  ;;  %v1557_v57 = vpop.f32.mrb[70].mxu0 }
 0x1e0   : > { %v790_v58 = vpop.f32.mrb[71].mxu1  ;;  %v3084_v59 = vmin.f32 %v2083_v29, %v1555_v53  ;;  %v1558_v60 = vadd.f32 %v1557_v57, %v788_v55  ;;  %v1559_v61 = vpop.f32.mrb[71].mxu0  ;;  %v264_v29 = vld [vmem:[%s2843_s27 + $0x188] sm:$0xff] }
 0x1e1   : > { %v392_v37 = vunpack.c.l.s8.bf16 %v264_v29 }
 0x1e2   : > { %1000 = vmatmul.mubr.bf16.gmra.mrb[176].mxu1 %v383_v52  ;;  %v3086_v62 = vmin.f32 %v2084_v32, %v1558_v60  ;;  %1769 = vmatmul.mubr.bf16.gmra.mrb[176].mxu0 %v383_v52  ;;  %v394_v52 = vunpack.c.h.s8.bf16 %v264_v29 }
 0x1e3   : > { %1007 = vmatprep.mubr.bf16.mxu1 %v386_v56  ;;  %1776 = vmatprep.mubr.bf16.mxu0 %v386_v56 }
 0x1e5   : > { %v793_v0 = vpop.f32.mrb[72].mxu1  ;;  %v1562_v1 = vpop.f32.mrb[72].mxu0 }
 0x1e6   : > { %v795_v2 = vpop.f32.mrb[73].mxu1  ;;  %v1563_v4 = vadd.f32 %v1562_v1, %v793_v0  ;;  %v1564_v5 = vpop.f32.mrb[73].mxu0 }
 0x1e7   : > { %v796_v6 = vpop.f32.mrb[74].mxu1  ;;  %v1565_v8 = vpop.f32.mrb[74].mxu0 }
 0x1e8   : > { %v798_v9 = vpop.f32.mrb[75].mxu1  ;;  %v2089_v10 = vmin.f32 %v3079_v44, %v1563_v4  ;;  %v1566_v11 = vadd.f32 %v1565_v8, %v796_v6  ;;  %v1567_v12 = vpop.f32.mrb[75].mxu0  ;;  %v263_v44 = vld [vmem:[%s2843_s27 + $0x180] sm:$0xff] }
 0x1e9   : > { %v391_v48 = vunpack.c.l.s8.bf16 %v263_v44  ;;  %v393_v63 = vunpack.c.h.s8.bf16 %v263_v44 }
 0x1ea   : > { %1008 = vmatmul.mubr.bf16.gmra.mrb[180].mxu1 %v385_v3  ;;  %v2090_v13 = vmin.f32 %v3081_v47, %v1566_v11  ;;  %1777 = vmatmul.mubr.bf16.gmra.mrb[180].mxu0 %v385_v3 }
 0x1eb   : > { %1015 = vmatprep.mubr.bf16.mxu1 %v388_v7  ;;  %1784 = vmatprep.mubr.bf16.mxu0 %v388_v7 }
 0x1ed   : > { %v801_v15 = vpop.f32.mrb[76].mxu1  ;;  %v1570_v16 = vpop.f32.mrb[76].mxu0 }
 0x1ee   : > { %v803_v17 = vpop.f32.mrb[77].mxu1  ;;  %v1571_v19 = vadd.f32 %v1570_v16, %v801_v15  ;;  %v1572_v20 = vpop.f32.mrb[77].mxu0 }
 0x1ef   : > { %v804_v21 = vpop.f32.mrb[78].mxu1  ;;  %v1573_v23 = vpop.f32.mrb[78].mxu0 }
 0x1f0   : > { %v806_v24 = vpop.f32.mrb[79].mxu1  ;;  %v2091_v25 = vmin.f32 %v3084_v59, %v1571_v19  ;;  %v1574_v26 = vadd.f32 %v1573_v23, %v804_v21  ;;  %v1575_v27 = vpop.f32.mrb[79].mxu0  ;;  %v266_v59 = vld [vmem:[%s2843_s27 + $0x198] sm:$0xff] }
 0x1f1   : > { %v396_v3 = vunpack.c.l.s8.bf16 %v266_v59 }
 0x1f2   : > { %1016 = vmatmul.mubr.bf16.gmra.mrb[184].mxu1 %v387_v18  ;;  %v2092_v28 = vmin.f32 %v3086_v62, %v1574_v26  ;;  %1785 = vmatmul.mubr.bf16.gmra.mrb[184].mxu0 %v387_v18  ;;  %v398_v18 = vunpack.c.h.s8.bf16 %v266_v59 }
 0x1f3   : > { %1023 = vmatprep.mubr.bf16.mxu1 %v390_v22  ;;  %1792 = vmatprep.mubr.bf16.mxu0 %v390_v22 }
 0x1f5   : > { %v809_v30 = vpop.f32.mrb[80].mxu1  ;;  %v1578_v31 = vpop.f32.mrb[80].mxu0 }
 0x1f6   : > { %v811_v32 = vpop.f32.mrb[81].mxu1  ;;  %v1579_v34 = vadd.f32 %v1578_v31, %v809_v30  ;;  %v1580_v35 = vpop.f32.mrb[81].mxu0 }
 0x1f7   : > { %v812_v36 = vpop.f32.mrb[82].mxu1  ;;  %v1581_v38 = vpop.f32.mrb[82].mxu0 }
 0x1f8   : > { %v814_v39 = vpop.f32.mrb[83].mxu1  ;;  %v3095_v40 = vmin.f32 %v2089_v10, %v1579_v34  ;;  %v1582_v41 = vadd.f32 %v1581_v38, %v812_v36  ;;  %v1583_v42 = vpop.f32.mrb[83].mxu0  ;;  %v265_v10 = vld [vmem:[%s2843_s27 + $0x190] sm:$0xff] }
 0x1f9   : > { %v395_v14 = vunpack.c.l.s8.bf16 %v265_v10  ;;  %v397_v29 = vunpack.c.h.s8.bf16 %v265_v10 }
 0x1fa   : > { %1024 = vmatmul.mubr.bf16.gmra.mrb[188].mxu1 %v389_v33  ;;  %v3097_v43 = vmin.f32 %v2090_v13, %v1582_v41  ;;  %1793 = vmatmul.mubr.bf16.gmra.mrb[188].mxu0 %v389_v33 }
 0x1fb   : > { %1031 = vmatprep.mubr.bf16.mxu1 %v392_v37  ;;  %1800 = vmatprep.mubr.bf16.mxu0 %v392_v37 }
 0x1fd   : > { %v817_v45 = vpop.f32.mrb[84].mxu1  ;;  %v1586_v46 = vpop.f32.mrb[84].mxu0 }
 0x1fe   : > { %v819_v47 = vpop.f32.mrb[85].mxu1  ;;  %v1587_v49 = vadd.f32 %v1586_v46, %v817_v45  ;;  %v1588_v50 = vpop.f32.mrb[85].mxu0 }
 0x1ff   : > { %v820_v51 = vpop.f32.mrb[86].mxu1  ;;  %v1589_v53 = vpop.f32.mrb[86].mxu0 }
 0x200   : > { %v822_v54 = vpop.f32.mrb[87].mxu1  ;;  %v3100_v55 = vmin.f32 %v2091_v25, %v1587_v49  ;;  %v1590_v56 = vadd.f32 %v1589_v53, %v820_v51  ;;  %v1591_v57 = vpop.f32.mrb[87].mxu0  ;;  %v268_v25 = vld [vmem:[%s2843_s27 + $0x1a8] sm:$0xff] }
 0x201   : > { %v400_v33 = vunpack.c.l.s8.bf16 %v268_v25 }
 0x202   : > { %1032 = vmatmul.mubr.bf16.gmra.mrb[192].mxu1 %v391_v48  ;;  %v3102_v58 = vmin.f32 %v2092_v28, %v1590_v56  ;;  %1801 = vmatmul.mubr.bf16.gmra.mrb[192].mxu0 %v391_v48  ;;  %v402_v48 = vunpack.c.h.s8.bf16 %v268_v25 }
 0x203   : > { %1039 = vmatprep.mubr.bf16.mxu1 %v394_v52  ;;  %1808 = vmatprep.mubr.bf16.mxu0 %v394_v52 }
 0x205   : > { %v825_v60 = vpop.f32.mrb[88].mxu1  ;;  %v1594_v61 = vpop.f32.mrb[88].mxu0 }
 0x206   : > { %v827_v62 = vpop.f32.mrb[89].mxu1  ;;  %v1595_v0 = vadd.f32 %v1594_v61, %v825_v60  ;;  %v1596_v1 = vpop.f32.mrb[89].mxu0 }
 0x207   : > { %v828_v2 = vpop.f32.mrb[90].mxu1  ;;  %v1597_v4 = vpop.f32.mrb[90].mxu0 }
 0x208   : > { %v830_v5 = vpop.f32.mrb[91].mxu1  ;;  %v2097_v6 = vmin.f32 %v3095_v40, %v1595_v0  ;;  %v1598_v7 = vadd.f32 %v1597_v4, %v828_v2  ;;  %v1599_v8 = vpop.f32.mrb[91].mxu0  ;;  %v267_v40 = vld [vmem:[%s2843_s27 + $0x1a0] sm:$0xff] }
 0x209   : > { %v399_v44 = vunpack.c.l.s8.bf16 %v267_v40  ;;  %v401_v59 = vunpack.c.h.s8.bf16 %v267_v40 }
 0x20a   : > { %1040 = vmatmul.mubr.bf16.gmra.mrb[196].mxu1 %v393_v63  ;;  %v2098_v9 = vmin.f32 %v3097_v43, %v1598_v7  ;;  %1809 = vmatmul.mubr.bf16.gmra.mrb[196].mxu0 %v393_v63 }
 0x20b   : > { %1047 = vmatprep.mubr.bf16.mxu1 %v396_v3  ;;  %1816 = vmatprep.mubr.bf16.mxu0 %v396_v3 }
 0x20d   : > { %v833_v11 = vpop.f32.mrb[92].mxu1  ;;  %v1602_v12 = vpop.f32.mrb[92].mxu0 }
 0x20e   : > { %v835_v13 = vpop.f32.mrb[93].mxu1  ;;  %v1603_v15 = vadd.f32 %v1602_v12, %v833_v11  ;;  %v1604_v16 = vpop.f32.mrb[93].mxu0 }
 0x20f   : > { %v836_v17 = vpop.f32.mrb[94].mxu1  ;;  %v1605_v19 = vpop.f32.mrb[94].mxu0 }
 0x210   : > { %v838_v20 = vpop.f32.mrb[95].mxu1  ;;  %v2099_v21 = vmin.f32 %v3100_v55, %v1603_v15  ;;  %v1606_v22 = vadd.f32 %v1605_v19, %v836_v17  ;;  %v1607_v23 = vpop.f32.mrb[95].mxu0  ;;  %v270_v55 = vld [vmem:[%s2843_s27 + $0x1b8] sm:$0xff] }
 0x211   : > { %v404_v63 = vunpack.c.l.s8.bf16 %v270_v55 }
 0x212   : > { %1048 = vmatmul.mubr.bf16.gmra.mrb[200].mxu1 %v395_v14  ;;  %v2100_v24 = vmin.f32 %v3102_v58, %v1606_v22  ;;  %1817 = vmatmul.mubr.bf16.gmra.mrb[200].mxu0 %v395_v14  ;;  %v406_v14 = vunpack.c.h.s8.bf16 %v270_v55 }
 0x213   : > { %1055 = vmatprep.mubr.bf16.mxu1 %v398_v18  ;;  %1824 = vmatprep.mubr.bf16.mxu0 %v398_v18 }
 0x215   : > { %v841_v26 = vpop.f32.mrb[96].mxu1  ;;  %v1610_v27 = vpop.f32.mrb[96].mxu0 }
 0x216   : > { %v843_v28 = vpop.f32.mrb[97].mxu1  ;;  %v1611_v30 = vadd.f32 %v1610_v27, %v841_v26  ;;  %v1612_v31 = vpop.f32.mrb[97].mxu0 }
 0x217   : > { %v844_v32 = vpop.f32.mrb[98].mxu1  ;;  %v1613_v34 = vpop.f32.mrb[98].mxu0 }
 0x218   : > { %v846_v35 = vpop.f32.mrb[99].mxu1  ;;  %v3111_v36 = vmin.f32 %v2097_v6, %v1611_v30  ;;  %v1614_v37 = vadd.f32 %v1613_v34, %v844_v32  ;;  %v1615_v38 = vpop.f32.mrb[99].mxu0  ;;  %v269_v6 = vld [vmem:[%s2843_s27 + $0x1b0] sm:$0xff] }
 0x219   : > { %v403_v10 = vunpack.c.l.s8.bf16 %v269_v6  ;;  %v405_v25 = vunpack.c.h.s8.bf16 %v269_v6 }
 0x21a   : > { %1056 = vmatmul.mubr.bf16.gmra.mrb[204].mxu1 %v397_v29  ;;  %v3113_v39 = vmin.f32 %v2098_v9, %v1614_v37  ;;  %1825 = vmatmul.mubr.bf16.gmra.mrb[204].mxu0 %v397_v29 }
 0x21b   : > { %1063 = vmatprep.mubr.bf16.mxu1 %v400_v33  ;;  %1832 = vmatprep.mubr.bf16.mxu0 %v400_v33 }
 0x21d   : > { %v849_v41 = vpop.f32.mrb[100].mxu1  ;;  %v1618_v42 = vpop.f32.mrb[100].mxu0 }
 0x21e   : > { %v851_v43 = vpop.f32.mrb[101].mxu1  ;;  %v1619_v45 = vadd.f32 %v1618_v42, %v849_v41  ;;  %v1620_v46 = vpop.f32.mrb[101].mxu0 }
 0x21f   : > { %v852_v47 = vpop.f32.mrb[102].mxu1  ;;  %v1621_v49 = vpop.f32.mrb[102].mxu0 }
 0x220   : > { %v854_v50 = vpop.f32.mrb[103].mxu1  ;;  %v3116_v51 = vmin.f32 %v2099_v21, %v1619_v45  ;;  %v1622_v52 = vadd.f32 %v1621_v49, %v852_v47  ;;  %v1623_v53 = vpop.f32.mrb[103].mxu0  ;;  %v272_v21 = vld [vmem:[%s2843_s27 + $0x1c8] sm:$0xff] }
 0x221   : > { %v408_v29 = vunpack.c.l.s8.bf16 %v272_v21 }
 0x222   : > { %1064 = vmatmul.mubr.bf16.gmra.mrb[208].mxu1 %v399_v44  ;;  %v3118_v54 = vmin.f32 %v2100_v24, %v1622_v52  ;;  %1833 = vmatmul.mubr.bf16.gmra.mrb[208].mxu0 %v399_v44  ;;  %v410_v44 = vunpack.c.h.s8.bf16 %v272_v21 }
 0x223   : > { %1071 = vmatprep.mubr.bf16.mxu1 %v402_v48  ;;  %1840 = vmatprep.mubr.bf16.mxu0 %v402_v48 }
 0x225   : > { %v857_v56 = vpop.f32.mrb[104].mxu1  ;;  %v1626_v57 = vpop.f32.mrb[104].mxu0 }
 0x226   : > { %v859_v58 = vpop.f32.mrb[105].mxu1  ;;  %v1627_v60 = vadd.f32 %v1626_v57, %v857_v56  ;;  %v1628_v61 = vpop.f32.mrb[105].mxu0 }
 0x227   : > { %v860_v62 = vpop.f32.mrb[106].mxu1  ;;  %v1629_v0 = vpop.f32.mrb[106].mxu0 }
 0x228   : > { %v862_v1 = vpop.f32.mrb[107].mxu1  ;;  %v2105_v2 = vmin.f32 %v3111_v36, %v1627_v60  ;;  %v1630_v3 = vadd.f32 %v1629_v0, %v860_v62  ;;  %v1631_v4 = vpop.f32.mrb[107].mxu0  ;;  %v271_v36 = vld [vmem:[%s2843_s27 + $0x1c0] sm:$0xff] }
 0x229   : > { %v407_v40 = vunpack.c.l.s8.bf16 %v271_v36  ;;  %v409_v55 = vunpack.c.h.s8.bf16 %v271_v36 }
 0x22a   : > { %1072 = vmatmul.mubr.bf16.gmra.mrb[212].mxu1 %v401_v59  ;;  %v2106_v5 = vmin.f32 %v3113_v39, %v1630_v3  ;;  %1841 = vmatmul.mubr.bf16.gmra.mrb[212].mxu0 %v401_v59 }
 0x22b   : > { %1079 = vmatprep.mubr.bf16.mxu1 %v404_v63  ;;  %1848 = vmatprep.mubr.bf16.mxu0 %v404_v63 }
 0x22d   : > { %v865_v7 = vpop.f32.mrb[108].mxu1  ;;  %v1634_v8 = vpop.f32.mrb[108].mxu0 }
 0x22e   : > { %v867_v9 = vpop.f32.mrb[109].mxu1  ;;  %v1635_v11 = vadd.f32 %v1634_v8, %v865_v7  ;;  %v1636_v12 = vpop.f32.mrb[109].mxu0 }
 0x22f   : > { %v868_v13 = vpop.f32.mrb[110].mxu1  ;;  %v1637_v15 = vpop.f32.mrb[110].mxu0 }
 0x230   : > { %v870_v16 = vpop.f32.mrb[111].mxu1  ;;  %v2107_v17 = vmin.f32 %v3116_v51, %v1635_v11  ;;  %v1638_v18 = vadd.f32 %v1637_v15, %v868_v13  ;;  %v1639_v19 = vpop.f32.mrb[111].mxu0  ;;  %v274_v51 = vld [vmem:[%s2843_s27 + $0x1d8] sm:$0xff] }
 0x231   : > { %v412_v59 = vunpack.c.l.s8.bf16 %v274_v51 }
 0x232   : > { %1080 = vmatmul.mubr.bf16.gmra.mrb[216].mxu1 %v403_v10  ;;  %v2108_v20 = vmin.f32 %v3118_v54, %v1638_v18  ;;  %1849 = vmatmul.mubr.bf16.gmra.mrb[216].mxu0 %v403_v10  ;;  %v414_v10 = vunpack.c.h.s8.bf16 %v274_v51 }
 0x233   : > { %1087 = vmatprep.mubr.bf16.mxu1 %v406_v14  ;;  %1856 = vmatprep.mubr.bf16.mxu0 %v406_v14 }
 0x235   : > { %v873_v22 = vpop.f32.mrb[112].mxu1  ;;  %v1642_v23 = vpop.f32.mrb[112].mxu0 }
 0x236   : > { %v875_v24 = vpop.f32.mrb[113].mxu1  ;;  %v1643_v26 = vadd.f32 %v1642_v23, %v873_v22  ;;  %v1644_v27 = vpop.f32.mrb[113].mxu0 }
 0x237   : > { %v876_v28 = vpop.f32.mrb[114].mxu1  ;;  %v1645_v30 = vpop.f32.mrb[114].mxu0 }
 0x238   : > { %v878_v31 = vpop.f32.mrb[115].mxu1  ;;  %v3127_v32 = vmin.f32 %v2105_v2, %v1643_v26  ;;  %v1646_v33 = vadd.f32 %v1645_v30, %v876_v28  ;;  %v1647_v34 = vpop.f32.mrb[115].mxu0  ;;  %v273_v2 = vld [vmem:[%s2843_s27 + $0x1d0] sm:$0xff] }
 0x239   : > { %v411_v6 = vunpack.c.l.s8.bf16 %v273_v2  ;;  %v413_v21 = vunpack.c.h.s8.bf16 %v273_v2 }
 0x23a   : > { %1088 = vmatmul.mubr.bf16.gmra.mrb[220].mxu1 %v405_v25  ;;  %v3129_v35 = vmin.f32 %v2106_v5, %v1646_v33  ;;  %1857 = vmatmul.mubr.bf16.gmra.mrb[220].mxu0 %v405_v25 }
 0x23b   : > { %1095 = vmatprep.mubr.bf16.mxu1 %v408_v29  ;;  %1864 = vmatprep.mubr.bf16.mxu0 %v408_v29 }
 0x23d   : > { %v881_v37 = vpop.f32.mrb[116].mxu1  ;;  %v1650_v38 = vpop.f32.mrb[116].mxu0 }
 0x23e   : > { %v883_v39 = vpop.f32.mrb[117].mxu1  ;;  %v1651_v41 = vadd.f32 %v1650_v38, %v881_v37  ;;  %v1652_v42 = vpop.f32.mrb[117].mxu0 }
 0x23f   : > { %v884_v43 = vpop.f32.mrb[118].mxu1  ;;  %v1653_v45 = vpop.f32.mrb[118].mxu0 }
 0x240   : > { %v886_v46 = vpop.f32.mrb[119].mxu1  ;;  %v3132_v47 = vmin.f32 %v2107_v17, %v1651_v41  ;;  %v1654_v48 = vadd.f32 %v1653_v45, %v884_v43  ;;  %v1655_v49 = vpop.f32.mrb[119].mxu0  ;;  %v276_v17 = vld [vmem:[%s2843_s27 + $0x1e8] sm:$0xff] }
 0x241   : > { %v416_v25 = vunpack.c.l.s8.bf16 %v276_v17 }
 0x242   : > { %1096 = vmatmul.mubr.bf16.gmra.mrb[224].mxu1 %v407_v40  ;;  %v3134_v50 = vmin.f32 %v2108_v20, %v1654_v48  ;;  %1865 = vmatmul.mubr.bf16.gmra.mrb[224].mxu0 %v407_v40  ;;  %v418_v40 = vunpack.c.h.s8.bf16 %v276_v17 }
 0x243   : > { %1103 = vmatprep.mubr.bf16.mxu1 %v410_v44  ;;  %1872 = vmatprep.mubr.bf16.mxu0 %v410_v44 }
 0x245   : > { %v889_v52 = vpop.f32.mrb[120].mxu1  ;;  %v1658_v53 = vpop.f32.mrb[120].mxu0 }
 0x246   : > { %v891_v54 = vpop.f32.mrb[121].mxu1  ;;  %v1659_v56 = vadd.f32 %v1658_v53, %v889_v52  ;;  %v1660_v57 = vpop.f32.mrb[121].mxu0 }
 0x247   : > { %v892_v58 = vpop.f32.mrb[122].mxu1  ;;  %v1661_v60 = vpop.f32.mrb[122].mxu0 }
 0x248   : > { %v894_v61 = vpop.f32.mrb[123].mxu1  ;;  %v2113_v62 = vmin.f32 %v3127_v32, %v1659_v56  ;;  %v1662_v63 = vadd.f32 %v1661_v60, %v892_v58  ;;  %v1663_v0 = vpop.f32.mrb[123].mxu0  ;;  %v275_v32 = vld [vmem:[%s2843_s27 + $0x1e0] sm:$0xff] }
 0x249   : > { %v415_v36 = vunpack.c.l.s8.bf16 %v275_v32  ;;  %v417_v51 = vunpack.c.h.s8.bf16 %v275_v32 }
 0x24a   : > { %1104 = vmatmul.mubr.bf16.gmra.mrb[228].mxu1 %v409_v55  ;;  %v2114_v1 = vmin.f32 %v3129_v35, %v1662_v63  ;;  %1873 = vmatmul.mubr.bf16.gmra.mrb[228].mxu0 %v409_v55 }
 0x24b   : > { %1111 = vmatprep.mubr.bf16.mxu1 %v412_v59  ;;  %1880 = vmatprep.mubr.bf16.mxu0 %v412_v59 }
 0x24d   : > { %v897_v3 = vpop.f32.mrb[124].mxu1  ;;  %v1666_v4 = vpop.f32.mrb[124].mxu0 }
 0x24e   : > { %v899_v5 = vpop.f32.mrb[125].mxu1  ;;  %v1667_v7 = vadd.f32 %v1666_v4, %v897_v3  ;;  %v1668_v8 = vpop.f32.mrb[125].mxu0 }
 0x24f   : > { %v900_v9 = vpop.f32.mrb[126].mxu1  ;;  %v1669_v11 = vpop.f32.mrb[126].mxu0 }
 0x250   : > { %v902_v12 = vpop.f32.mrb[127].mxu1  ;;  %v2115_v13 = vmin.f32 %v3132_v47, %v1667_v7  ;;  %v1670_v14 = vadd.f32 %v1669_v11, %v900_v9  ;;  %v1671_v15 = vpop.f32.mrb[127].mxu0  ;;  %v278_v47 = vld [vmem:[%s2843_s27 + $0x1f8] sm:$0xff] }
 0x251   : > { %v420_v55 = vunpack.c.l.s8.bf16 %v278_v47 }
 0x252   : > { %1112 = vmatmul.mubr.bf16.gmra.mrb[232].mxu1 %v411_v6  ;;  %v2116_v16 = vmin.f32 %v3134_v50, %v1670_v14  ;;  %1881 = vmatmul.mubr.bf16.gmra.mrb[232].mxu0 %v411_v6  ;;  %v422_v6 = vunpack.c.h.s8.bf16 %v278_v47 }
 0x253   : > { %1119 = vmatprep.mubr.bf16.mxu1 %v414_v10  ;;  %1888 = vmatprep.mubr.bf16.mxu0 %v414_v10 }
 0x255   : > { %v905_v18 = vpop.f32.mrb[128].mxu1  ;;  %v1674_v19 = vpop.f32.mrb[128].mxu0 }
 0x256   : > { %v907_v20 = vpop.f32.mrb[129].mxu1  ;;  %v1675_v22 = vadd.f32 %v1674_v19, %v905_v18  ;;  %v1676_v23 = vpop.f32.mrb[129].mxu0 }
 0x257   : > { %v908_v24 = vpop.f32.mrb[130].mxu1  ;;  %v1677_v26 = vpop.f32.mrb[130].mxu0 }
 0x258   : > { %v910_v27 = vpop.f32.mrb[131].mxu1  ;;  %v3143_v28 = vmin.f32 %v2113_v62, %v1675_v22  ;;  %v1678_v29 = vadd.f32 %v1677_v26, %v908_v24  ;;  %v1679_v30 = vpop.f32.mrb[131].mxu0  ;;  %v277_v62 = vld [vmem:[%s2843_s27 + $0x1f0] sm:$0xff] }
 0x259   : > { %v419_v2 = vunpack.c.l.s8.bf16 %v277_v62  ;;  %v421_v17 = vunpack.c.h.s8.bf16 %v277_v62 }
 0x25a   : > { %1120 = vmatmul.mubr.bf16.gmra.mrb[236].mxu1 %v413_v21  ;;  %v3145_v31 = vmin.f32 %v2114_v1, %v1678_v29  ;;  %1889 = vmatmul.mubr.bf16.gmra.mrb[236].mxu0 %v413_v21 }
 0x25b   : > { %1127 = vmatprep.mubr.bf16.mxu1 %v416_v25  ;;  %1896 = vmatprep.mubr.bf16.mxu0 %v416_v25 }
 0x25d   : > { %v913_v33 = vpop.f32.mrb[132].mxu1  ;;  %v1682_v34 = vpop.f32.mrb[132].mxu0 }
 0x25e   : > { %v915_v35 = vpop.f32.mrb[133].mxu1  ;;  %v1683_v37 = vadd.f32 %v1682_v34, %v913_v33  ;;  %v1684_v38 = vpop.f32.mrb[133].mxu0 }
 0x25f   : > { %v916_v39 = vpop.f32.mrb[134].mxu1  ;;  %v1685_v41 = vpop.f32.mrb[134].mxu0 }
 0x260   : > { %v918_v42 = vpop.f32.mrb[135].mxu1  ;;  %v3148_v43 = vmin.f32 %v2115_v13, %v1683_v37  ;;  %v1686_v44 = vadd.f32 %v1685_v41, %v916_v39  ;;  %v1687_v45 = vpop.f32.mrb[135].mxu0  ;;  %v280_v13 = vld [vmem:[%s2843_s27 + $0x208] sm:$0xff] }
 0x261   : > { %v424_v21 = vunpack.c.l.s8.bf16 %v280_v13 }
 0x262   : > { %1128 = vmatmul.mubr.bf16.gmra.mrb[240].mxu1 %v415_v36  ;;  %v3150_v46 = vmin.f32 %v2116_v16, %v1686_v44  ;;  %1897 = vmatmul.mubr.bf16.gmra.mrb[240].mxu0 %v415_v36  ;;  %v426_v36 = vunpack.c.h.s8.bf16 %v280_v13 }
 0x263   : > { %1135 = vmatprep.mubr.bf16.mxu1 %v418_v40  ;;  %1904 = vmatprep.mubr.bf16.mxu0 %v418_v40 }
 0x265   : > { %v921_v48 = vpop.f32.mrb[136].mxu1  ;;  %v1690_v49 = vpop.f32.mrb[136].mxu0 }
 0x266   : > { %v923_v50 = vpop.f32.mrb[137].mxu1  ;;  %v1691_v52 = vadd.f32 %v1690_v49, %v921_v48  ;;  %v1692_v53 = vpop.f32.mrb[137].mxu0 }
 0x267   : > { %v924_v54 = vpop.f32.mrb[138].mxu1  ;;  %v1693_v56 = vpop.f32.mrb[138].mxu0 }
 0x268   : > { %v926_v57 = vpop.f32.mrb[139].mxu1  ;;  %v2121_v58 = vmin.f32 %v3143_v28, %v1691_v52  ;;  %v1694_v59 = vadd.f32 %v1693_v56, %v924_v54  ;;  %v1695_v60 = vpop.f32.mrb[139].mxu0  ;;  %v279_v28 = vld [vmem:[%s2843_s27 + $0x200] sm:$0xff] }
 0x269   : > { %v423_v32 = vunpack.c.l.s8.bf16 %v279_v28  ;;  %v425_v47 = vunpack.c.h.s8.bf16 %v279_v28 }
 0x26a   : > { %1136 = vmatmul.mubr.bf16.gmra.mrb[244].mxu1 %v417_v51  ;;  %v2122_v61 = vmin.f32 %v3145_v31, %v1694_v59  ;;  %1905 = vmatmul.mubr.bf16.gmra.mrb[244].mxu0 %v417_v51 }
 0x26b   : > { %1143 = vmatprep.mubr.bf16.mxu1 %v420_v55  ;;  %1912 = vmatprep.mubr.bf16.mxu0 %v420_v55 }
 0x26d   : > { %v929_v63 = vpop.f32.mrb[140].mxu1  ;;  %v1698_v0 = vpop.f32.mrb[140].mxu0 }
 0x26e   : > { %v931_v1 = vpop.f32.mrb[141].mxu1  ;;  %v1699_v3 = vadd.f32 %v1698_v0, %v929_v63  ;;  %v1700_v4 = vpop.f32.mrb[141].mxu0 }
 0x26f   : > { %v932_v5 = vpop.f32.mrb[142].mxu1  ;;  %v1701_v7 = vpop.f32.mrb[142].mxu0 }
 0x270   : > { %v934_v8 = vpop.f32.mrb[143].mxu1  ;;  %v2123_v9 = vmin.f32 %v3148_v43, %v1699_v3  ;;  %v1702_v10 = vadd.f32 %v1701_v7, %v932_v5  ;;  %v1703_v11 = vpop.f32.mrb[143].mxu0  ;;  %v282_v43 = vld [vmem:[%s2843_s27 + $0x218] sm:$0xff] }
 0x271   : > { %v428_v51 = vunpack.c.l.s8.bf16 %v282_v43 }
 0x272   : > { %1144 = vmatmul.mubr.bf16.gmra.mrb[248].mxu1 %v419_v2  ;;  %v2124_v12 = vmin.f32 %v3150_v46, %v1702_v10  ;;  %1913 = vmatmul.mubr.bf16.gmra.mrb[248].mxu0 %v419_v2  ;;  %v430_v2 = vunpack.c.h.s8.bf16 %v282_v43 }
 0x273   : > { %1151 = vmatprep.mubr.bf16.mxu1 %v422_v6  ;;  %1920 = vmatprep.mubr.bf16.mxu0 %v422_v6 }
 0x275   : > { %v937_v14 = vpop.f32.mrb[144].mxu1  ;;  %v1706_v15 = vpop.f32.mrb[144].mxu0 }
 0x276   : > { %v939_v16 = vpop.f32.mrb[145].mxu1  ;;  %v1707_v18 = vadd.f32 %v1706_v15, %v937_v14  ;;  %v1708_v19 = vpop.f32.mrb[145].mxu0 }
 0x277   : > { %v940_v20 = vpop.f32.mrb[146].mxu1  ;;  %v1709_v22 = vpop.f32.mrb[146].mxu0 }
 0x278   : > { %v942_v23 = vpop.f32.mrb[147].mxu1  ;;  %v3159_v24 = vmin.f32 %v2121_v58, %v1707_v18  ;;  %v1710_v25 = vadd.f32 %v1709_v22, %v940_v20  ;;  %v1711_v26 = vpop.f32.mrb[147].mxu0  ;;  %v281_v58 = vld [vmem:[%s2843_s27 + $0x210] sm:$0xff] }
 0x279   : > { %v427_v62 = vunpack.c.l.s8.bf16 %v281_v58  ;;  %v429_v13 = vunpack.c.h.s8.bf16 %v281_v58 }
 0x27a   : > { %1152 = vmatmul.mubr.bf16.gmra.mrb[252].mxu1 %v421_v17  ;;  %v3161_v27 = vmin.f32 %v2122_v61, %v1710_v25  ;;  %1921 = vmatmul.mubr.bf16.gmra.mrb[252].mxu0 %v421_v17 }
 0x27b   : > { %1159 = vmatprep.mubr.bf16.mxu1 %v424_v21  ;;  %1928 = vmatprep.mubr.bf16.mxu0 %v424_v21 }
 0x27d   : > { %v945_v29 = vpop.f32.mrb[148].mxu1  ;;  %v1714_v30 = vpop.f32.mrb[148].mxu0 }
 0x27e   : > { %v947_v31 = vpop.f32.mrb[149].mxu1  ;;  %v1715_v33 = vadd.f32 %v1714_v30, %v945_v29  ;;  %v1716_v34 = vpop.f32.mrb[149].mxu0 }
 0x27f   : > { %v948_v35 = vpop.f32.mrb[150].mxu1  ;;  %v1717_v37 = vpop.f32.mrb[150].mxu0 }
 0x280   : > { %v950_v38 = vpop.f32.mrb[151].mxu1  ;;  %v3164_v39 = vmin.f32 %v2123_v9, %v1715_v33  ;;  %v1718_v40 = vadd.f32 %v1717_v37, %v948_v35  ;;  %v1719_v41 = vpop.f32.mrb[151].mxu0  ;;  %v284_v9 = vld [vmem:[%s2843_s27 + $0x228] sm:$0xff] }
 0x281   : > { %v432_v17 = vunpack.c.l.s8.bf16 %v284_v9 }
 0x282   : > { %1160 = vmatmul.mubr.bf16.gmra.mrb[148].mxu1 %v423_v32  ;;  %v3166_v42 = vmin.f32 %v2124_v12, %v1718_v40  ;;  %1929 = vmatmul.mubr.bf16.gmra.mrb[0].mxu0 %v423_v32  ;;  %v434_v32 = vunpack.c.h.s8.bf16 %v284_v9 }
 0x283   : > { %1167 = vmatprep.mubr.bf16.mxu1 %v426_v36  ;;  %1936 = vmatprep.mubr.bf16.mxu0 %v426_v36 }
 0x285   : > { %v953_v44 = vpop.f32.mrb[152].mxu1  ;;  %v1722_v45 = vpop.f32.mrb[152].mxu0 }
 0x286   : > { %v955_v46 = vpop.f32.mrb[153].mxu1  ;;  %v1723_v48 = vadd.f32 %v1722_v45, %v953_v44  ;;  %v1724_v49 = vpop.f32.mrb[153].mxu0 }
 0x287   : > { %v956_v50 = vpop.f32.mrb[154].mxu1  ;;  %v1725_v52 = vpop.f32.mrb[154].mxu0 }
 0x288   : > { %v958_v53 = vpop.f32.mrb[155].mxu1  ;;  %v2129_v54 = vmin.f32 %v3159_v24, %v1723_v48  ;;  %v1726_v55 = vadd.f32 %v1725_v52, %v956_v50  ;;  %v1727_v56 = vpop.f32.mrb[155].mxu0  ;;  %v283_v24 = vld [vmem:[%s2843_s27 + $0x220] sm:$0xff] }
 0x289   : > { %v431_v28 = vunpack.c.l.s8.bf16 %v283_v24  ;;  %v433_v43 = vunpack.c.h.s8.bf16 %v283_v24 }
 0x28a   : > { %1168 = vmatmul.mubr.bf16.gmra.mrb[152].mxu1 %v425_v47  ;;  %v2130_v57 = vmin.f32 %v3161_v27, %v1726_v55  ;;  %1937 = vmatmul.mubr.bf16.gmra.mrb[4].mxu0 %v425_v47 }
 0x28b   : > { %1175 = vmatprep.mubr.bf16.mxu1 %v428_v51  ;;  %1944 = vmatprep.mubr.bf16.mxu0 %v428_v51 }
 0x28d   : > { %v961_v59 = vpop.f32.mrb[156].mxu1  ;;  %v1730_v60 = vpop.f32.mrb[156].mxu0 }
 0x28e   : > { %v963_v61 = vpop.f32.mrb[157].mxu1  ;;  %v1731_v63 = vadd.f32 %v1730_v60, %v961_v59  ;;  %v1732_v0 = vpop.f32.mrb[157].mxu0 }
 0x28f   : > { %v964_v1 = vpop.f32.mrb[158].mxu1  ;;  %v1733_v3 = vpop.f32.mrb[158].mxu0 }
 0x290   : > { %v966_v4 = vpop.f32.mrb[159].mxu1  ;;  %v2131_v5 = vmin.f32 %v3164_v39, %v1731_v63  ;;  %v1734_v6 = vadd.f32 %v1733_v3, %v964_v1  ;;  %v1735_v7 = vpop.f32.mrb[159].mxu0  ;;  %v286_v39 = vld [vmem:[%s2843_s27 + $0x238] sm:$0xff] }
 0x291   : > { %v436_v47 = vunpack.c.l.s8.bf16 %v286_v39 }
 0x292   : > { %1176 = vmatmul.mubr.bf16.gmra.mrb[156].mxu1 %v427_v62  ;;  %v2132_v8 = vmin.f32 %v3166_v42, %v1734_v6  ;;  %1945 = vmatmul.mubr.bf16.gmra.mrb[8].mxu0 %v427_v62  ;;  %v438_v62 = vunpack.c.h.s8.bf16 %v286_v39 }
 0x293   : > { %1183 = vmatprep.mubr.bf16.mxu1 %v430_v2  ;;  %1952 = vmatprep.mubr.bf16.mxu0 %v430_v2 }
 0x295   : > { %v969_v10 = vpop.f32.mrb[160].mxu1  ;;  %v1738_v11 = vpop.f32.mrb[160].mxu0 }
 0x296   : > { %v971_v12 = vpop.f32.mrb[161].mxu1  ;;  %v1739_v14 = vadd.f32 %v1738_v11, %v969_v10  ;;  %v1740_v15 = vpop.f32.mrb[161].mxu0 }
 0x297   : > { %v972_v16 = vpop.f32.mrb[162].mxu1  ;;  %v1741_v18 = vpop.f32.mrb[162].mxu0 }
 0x298   : > { %v974_v19 = vpop.f32.mrb[163].mxu1  ;;  %v3175_v20 = vmin.f32 %v2129_v54, %v1739_v14  ;;  %v1742_v21 = vadd.f32 %v1741_v18, %v972_v16  ;;  %v1743_v22 = vpop.f32.mrb[163].mxu0  ;;  %v285_v54 = vld [vmem:[%s2843_s27 + $0x230] sm:$0xff] }
 0x299   : > { %v435_v58 = vunpack.c.l.s8.bf16 %v285_v54  ;;  %v437_v9 = vunpack.c.h.s8.bf16 %v285_v54 }
 0x29a   : > { %1184 = vmatmul.mubr.bf16.gmra.mrb[160].mxu1 %v429_v13  ;;  %v3177_v23 = vmin.f32 %v2130_v57, %v1742_v21  ;;  %1953 = vmatmul.mubr.bf16.gmra.mrb[12].mxu0 %v429_v13 }
 0x29b   : > { %1191 = vmatprep.mubr.bf16.mxu1 %v432_v17  ;;  %1960 = vmatprep.mubr.bf16.mxu0 %v432_v17 }
 0x29d   : > { %v977_v25 = vpop.f32.mrb[164].mxu1  ;;  %v1746_v26 = vpop.f32.mrb[164].mxu0 }
 0x29e   : > { %v979_v27 = vpop.f32.mrb[165].mxu1  ;;  %v1747_v29 = vadd.f32 %v1746_v26, %v977_v25  ;;  %v1748_v30 = vpop.f32.mrb[165].mxu0 }
 0x29f   : > { %v980_v31 = vpop.f32.mrb[166].mxu1  ;;  %v1749_v33 = vpop.f32.mrb[166].mxu0 }
 0x2a0   : > { %v982_v34 = vpop.f32.mrb[167].mxu1  ;;  %v3180_v35 = vmin.f32 %v2131_v5, %v1747_v29  ;;  %v1750_v36 = vadd.f32 %v1749_v33, %v980_v31  ;;  %v1751_v37 = vpop.f32.mrb[167].mxu0  ;;  %v288_v5 = vld [vmem:[%s2843_s27 + $0x248] sm:$0xff] }
 0x2a1   : > { %v440_v13 = vunpack.c.l.s8.bf16 %v288_v5 }
 0x2a2   : > { %1192 = vmatmul.mubr.bf16.gmra.mrb[164].mxu1 %v431_v28  ;;  %v3182_v38 = vmin.f32 %v2132_v8, %v1750_v36  ;;  %1961 = vmatmul.mubr.bf16.gmra.mrb[16].mxu0 %v431_v28  ;;  %v442_v28 = vunpack.c.h.s8.bf16 %v288_v5 }
 0x2a3   : > { %1199 = vmatprep.mubr.bf16.mxu1 %v434_v32  ;;  %1968 = vmatprep.mubr.bf16.mxu0 %v434_v32 }
 0x2a5   : > { %v985_v40 = vpop.f32.mrb[168].mxu1  ;;  %v1754_v41 = vpop.f32.mrb[168].mxu0 }
 0x2a6   : > { %v987_v42 = vpop.f32.mrb[169].mxu1  ;;  %v1755_v44 = vadd.f32 %v1754_v41, %v985_v40  ;;  %v1756_v45 = vpop.f32.mrb[169].mxu0 }
 0x2a7   : > { %v988_v46 = vpop.f32.mrb[170].mxu1  ;;  %v1757_v48 = vpop.f32.mrb[170].mxu0 }
 0x2a8   : > { %v990_v49 = vpop.f32.mrb[171].mxu1  ;;  %v2137_v50 = vmin.f32 %v3175_v20, %v1755_v44  ;;  %v1758_v51 = vadd.f32 %v1757_v48, %v988_v46  ;;  %v1759_v52 = vpop.f32.mrb[171].mxu0  ;;  %v287_v20 = vld [vmem:[%s2843_s27 + $0x240] sm:$0xff] }
 0x2a9   : > { %v439_v24 = vunpack.c.l.s8.bf16 %v287_v20  ;;  %v441_v39 = vunpack.c.h.s8.bf16 %v287_v20 }
 0x2aa   : > { %1200 = vmatmul.mubr.bf16.gmra.mrb[168].mxu1 %v433_v43  ;;  %v2138_v53 = vmin.f32 %v3177_v23, %v1758_v51  ;;  %1969 = vmatmul.mubr.bf16.gmra.mrb[20].mxu0 %v433_v43 }
 0x2ab   : > { %1207 = vmatprep.mubr.bf16.mxu1 %v436_v47  ;;  %1976 = vmatprep.mubr.bf16.mxu0 %v436_v47 }
 0x2ad   : > { %v993_v55 = vpop.f32.mrb[172].mxu1  ;;  %v1762_v56 = vpop.f32.mrb[172].mxu0 }
 0x2ae   : > { %v995_v57 = vpop.f32.mrb[173].mxu1  ;;  %v1763_v59 = vadd.f32 %v1762_v56, %v993_v55  ;;  %v1764_v60 = vpop.f32.mrb[173].mxu0 }
 0x2af   : > { %v996_v61 = vpop.f32.mrb[174].mxu1  ;;  %v1765_v63 = vpop.f32.mrb[174].mxu0 }
 0x2b0   : > { %v998_v0 = vpop.f32.mrb[175].mxu1  ;;  %v2139_v1 = vmin.f32 %v3180_v35, %v1763_v59  ;;  %v1766_v2 = vadd.f32 %v1765_v63, %v996_v61  ;;  %v1767_v3 = vpop.f32.mrb[175].mxu0  ;;  %v290_v35 = vld [vmem:[%s2843_s27 + $0x258] sm:$0xff] }
 0x2b1   : > { %v444_v43 = vunpack.c.l.s8.bf16 %v290_v35 }
 0x2b2   : > { %1208 = vmatmul.mubr.bf16.gmra.mrb[172].mxu1 %v435_v58  ;;  %v2140_v4 = vmin.f32 %v3182_v38, %v1766_v2  ;;  %1977 = vmatmul.mubr.bf16.gmra.mrb[24].mxu0 %v435_v58  ;;  %v446_v58 = vunpack.c.h.s8.bf16 %v290_v35 }
 0x2b3   : > { %1215 = vmatprep.mubr.bf16.mxu1 %v438_v62  ;;  %1984 = vmatprep.mubr.bf16.mxu0 %v438_v62 }
 0x2b5   : > { %v1001_v6 = vpop.f32.mrb[176].mxu1  ;;  %v1770_v7 = vpop.f32.mrb[176].mxu0 }
 0x2b6   : > { %v1003_v8 = vpop.f32.mrb[177].mxu1  ;;  %v1771_v10 = vadd.f32 %v1770_v7, %v1001_v6  ;;  %v1772_v11 = vpop.f32.mrb[177].mxu0 }
 0x2b7   : > { %v1004_v12 = vpop.f32.mrb[178].mxu1  ;;  %v1773_v14 = vpop.f32.mrb[178].mxu0 }
 0x2b8   : > { %v1006_v15 = vpop.f32.mrb[179].mxu1  ;;  %v3191_v16 = vmin.f32 %v2137_v50, %v1771_v10  ;;  %v1774_v17 = vadd.f32 %v1773_v14, %v1004_v12  ;;  %v1775_v18 = vpop.f32.mrb[179].mxu0  ;;  %v289_v50 = vld [vmem:[%s2843_s27 + $0x250] sm:$0xff] }
 0x2b9   : > { %v443_v54 = vunpack.c.l.s8.bf16 %v289_v50  ;;  %v445_v5 = vunpack.c.h.s8.bf16 %v289_v50 }
 0x2ba   : > { %1216 = vmatmul.mubr.bf16.gmra.mrb[176].mxu1 %v437_v9  ;;  %v3193_v19 = vmin.f32 %v2138_v53, %v1774_v17  ;;  %1985 = vmatmul.mubr.bf16.gmra.mrb[28].mxu0 %v437_v9 }
 0x2bb   : > { %1223 = vmatprep.mubr.bf16.mxu1 %v440_v13  ;;  %1992 = vmatprep.mubr.bf16.mxu0 %v440_v13 }
 0x2bd   : > { %v1009_v21 = vpop.f32.mrb[180].mxu1  ;;  %v1778_v22 = vpop.f32.mrb[180].mxu0 }
 0x2be   : > { %v1011_v23 = vpop.f32.mrb[181].mxu1  ;;  %v1779_v25 = vadd.f32 %v1778_v22, %v1009_v21  ;;  %v1780_v26 = vpop.f32.mrb[181].mxu0 }
 0x2bf   : > { %v1012_v27 = vpop.f32.mrb[182].mxu1  ;;  %v1781_v29 = vpop.f32.mrb[182].mxu0 }
 0x2c0   : > { %v1014_v30 = vpop.f32.mrb[183].mxu1  ;;  %v3196_v31 = vmin.f32 %v2139_v1, %v1779_v25  ;;  %v1782_v32 = vadd.f32 %v1781_v29, %v1012_v27  ;;  %v1783_v33 = vpop.f32.mrb[183].mxu0  ;;  %v292_v1 = vld [vmem:[%s2843_s27 + $0x268] sm:$0xff] }
 0x2c1   : > { %v448_v9 = vunpack.c.l.s8.bf16 %v292_v1 }
 0x2c2   : > { %1224 = vmatmul.mubr.bf16.gmra.mrb[180].mxu1 %v439_v24  ;;  %v3198_v34 = vmin.f32 %v2140_v4, %v1782_v32  ;;  %1993 = vmatmul.mubr.bf16.gmra.mrb[32].mxu0 %v439_v24  ;;  %v450_v24 = vunpack.c.h.s8.bf16 %v292_v1 }
 0x2c3   : > { %1231 = vmatprep.mubr.bf16.mxu1 %v442_v28  ;;  %2000 = vmatprep.mubr.bf16.mxu0 %v442_v28 }
 0x2c5   : > { %v1017_v36 = vpop.f32.mrb[184].mxu1  ;;  %v1786_v37 = vpop.f32.mrb[184].mxu0 }
 0x2c6   : > { %v1019_v38 = vpop.f32.mrb[185].mxu1  ;;  %v1787_v40 = vadd.f32 %v1786_v37, %v1017_v36  ;;  %v1788_v41 = vpop.f32.mrb[185].mxu0 }
 0x2c7   : > { %v1020_v42 = vpop.f32.mrb[186].mxu1  ;;  %v1789_v44 = vpop.f32.mrb[186].mxu0 }
 0x2c8   : > { %v1022_v45 = vpop.f32.mrb[187].mxu1  ;;  %v2145_v46 = vmin.f32 %v3191_v16, %v1787_v40  ;;  %v1790_v47 = vadd.f32 %v1789_v44, %v1020_v42  ;;  %v1791_v48 = vpop.f32.mrb[187].mxu0  ;;  %v291_v16 = vld [vmem:[%s2843_s27 + $0x260] sm:$0xff] }
 0x2c9   : > { %v447_v20 = vunpack.c.l.s8.bf16 %v291_v16  ;;  %v449_v35 = vunpack.c.h.s8.bf16 %v291_v16 }
 0x2ca   : > { %1232 = vmatmul.mubr.bf16.gmra.mrb[184].mxu1 %v441_v39  ;;  %v2146_v49 = vmin.f32 %v3193_v19, %v1790_v47  ;;  %2001 = vmatmul.mubr.bf16.gmra.mrb[36].mxu0 %v441_v39 }
 0x2cb   : > { %1239 = vmatprep.mubr.bf16.mxu1 %v444_v43  ;;  %2008 = vmatprep.mubr.bf16.mxu0 %v444_v43 }
 0x2cd   : > { %v1025_v51 = vpop.f32.mrb[188].mxu1  ;;  %v1794_v52 = vpop.f32.mrb[188].mxu0 }
 0x2ce   : > { %v1027_v53 = vpop.f32.mrb[189].mxu1  ;;  %v1795_v55 = vadd.f32 %v1794_v52, %v1025_v51  ;;  %v1796_v56 = vpop.f32.mrb[189].mxu0 }
 0x2cf   : > { %v1028_v57 = vpop.f32.mrb[190].mxu1  ;;  %v1797_v59 = vpop.f32.mrb[190].mxu0 }
 0x2d0   : > { %v1030_v60 = vpop.f32.mrb[191].mxu1  ;;  %v2147_v61 = vmin.f32 %v3196_v31, %v1795_v55  ;;  %v1798_v62 = vadd.f32 %v1797_v59, %v1028_v57  ;;  %v1799_v63 = vpop.f32.mrb[191].mxu0  ;;  %v294_v31 = vld [vmem:[%s2843_s27 + $0x278] sm:$0xff] }
 0x2d1   : > { %v452_v39 = vunpack.c.l.s8.bf16 %v294_v31 }
 0x2d2   : > { %1240 = vmatmul.mubr.bf16.gmra.mrb[188].mxu1 %v443_v54  ;;  %v2148_v0 = vmin.f32 %v3198_v34, %v1798_v62  ;;  %2009 = vmatmul.mubr.bf16.gmra.mrb[40].mxu0 %v443_v54  ;;  %v454_v54 = vunpack.c.h.s8.bf16 %v294_v31 }
 0x2d3   : > { %1247 = vmatprep.mubr.bf16.mxu1 %v446_v58  ;;  %2016 = vmatprep.mubr.bf16.mxu0 %v446_v58 }
 0x2d5   : > { %v1033_v2 = vpop.f32.mrb[192].mxu1  ;;  %v1802_v3 = vpop.f32.mrb[192].mxu0 }
 0x2d6   : > { %v1035_v4 = vpop.f32.mrb[193].mxu1  ;;  %v1803_v6 = vadd.f32 %v1802_v3, %v1033_v2  ;;  %v1804_v7 = vpop.f32.mrb[193].mxu0 }
 0x2d7   : > { %v1036_v8 = vpop.f32.mrb[194].mxu1  ;;  %v1805_v10 = vpop.f32.mrb[194].mxu0 }
 0x2d8   : > { %v1038_v11 = vpop.f32.mrb[195].mxu1  ;;  %v3207_v12 = vmin.f32 %v2145_v46, %v1803_v6  ;;  %v1806_v13 = vadd.f32 %v1805_v10, %v1036_v8  ;;  %v1807_v14 = vpop.f32.mrb[195].mxu0  ;;  %v293_v46 = vld [vmem:[%s2843_s27 + $0x270] sm:$0xff] }
 0x2d9   : > { %v451_v50 = vunpack.c.l.s8.bf16 %v293_v46 }
 0x2da   : > { %1248 = vmatmul.mubr.bf16.gmra.mrb[192].mxu1 %v445_v5  ;;  %v3209_v15 = vmin.f32 %v2146_v49, %v1806_v13  ;;  %2017 = vmatmul.mubr.bf16.gmra.mrb[44].mxu0 %v445_v5 }
 0x2db   : > { %1255 = vmatprep.mubr.bf16.mxu1 %v448_v9  ;;  %2024 = vmatprep.mubr.bf16.mxu0 %v448_v9 }
 0x2dd   : > { %v1041_v17 = vpop.f32.mrb[196].mxu1  ;;  %v1810_v18 = vpop.f32.mrb[196].mxu0 }
 0x2de   : > { %v1043_v19 = vpop.f32.mrb[197].mxu1  ;;  %v1811_v21 = vadd.f32 %v1810_v18, %v1041_v17  ;;  %v1812_v22 = vpop.f32.mrb[197].mxu0 }
 0x2df   : > { %v1044_v23 = vpop.f32.mrb[198].mxu1  ;;  %v1813_v25 = vpop.f32.mrb[198].mxu0 }
 0x2e0   : > { %v1046_v26 = vpop.f32.mrb[199].mxu1  ;;  %v3212_v27 = vmin.f32 %v2147_v61, %v1811_v21  ;;  %v1814_v28 = vadd.f32 %v1813_v25, %v1044_v23  ;;  %v1815_v29 = vpop.f32.mrb[199].mxu0 }
 0x2e2   : > { %1256 = vmatmul.mubr.bf16.gmra.mrb[196].mxu1 %v447_v20  ;;  %v3214_v30 = vmin.f32 %v2148_v0, %v1814_v28  ;;  %2025 = vmatmul.mubr.bf16.gmra.mrb[48].mxu0 %v447_v20  ;;  %v453_v0 = vunpack.c.h.s8.bf16 %v293_v46 }
 0x2e3   : > { %1263 = vmatprep.mubr.bf16.mxu1 %v450_v24  ;;  %2032 = vmatprep.mubr.bf16.mxu0 %v450_v24 }
 0x2e5   : > { %v1049_v32 = vpop.f32.mrb[200].mxu1  ;;  %v1818_v33 = vpop.f32.mrb[200].mxu0 }
 0x2e6   : > { %v1051_v34 = vpop.f32.mrb[201].mxu1  ;;  %v1819_v36 = vadd.f32 %v1818_v33, %v1049_v32  ;;  %v1820_v37 = vpop.f32.mrb[201].mxu0 }
 0x2e7   : > { %v1052_v38 = vpop.f32.mrb[202].mxu1  ;;  %v1821_v40 = vpop.f32.mrb[202].mxu0 }
 0x2e8   : > { %v1054_v41 = vpop.f32.mrb[203].mxu1  ;;  %v2153_v42 = vmin.f32 %v3207_v12, %v1819_v36  ;;  %v1822_v43 = vadd.f32 %v1821_v40, %v1052_v38  ;;  %v1823_v44 = vpop.f32.mrb[203].mxu0 }
 0x2ea   : > { %1264 = vmatmul.mubr.bf16.gmra.mrb[200].mxu1 %v449_v35  ;;  %v2154_v45 = vmin.f32 %v3209_v15, %v1822_v43  ;;  %2033 = vmatmul.mubr.bf16.gmra.mrb[52].mxu0 %v449_v35 }
 0x2eb   : > { %1271 = vmatprep.mubr.bf16.mxu1 %v452_v39  ;;  %2040 = vmatprep.mubr.bf16.mxu0 %v452_v39 }
 0x2ed   : > { %v1057_v47 = vpop.f32.mrb[204].mxu1  ;;  %v1826_v48 = vpop.f32.mrb[204].mxu0 }
 0x2ee   : > { %v1059_v49 = vpop.f32.mrb[205].mxu1  ;;  %v1827_v51 = vadd.f32 %v1826_v48, %v1057_v47  ;;  %v1828_v52 = vpop.f32.mrb[205].mxu0 }
 0x2ef   : > { %v1060_v53 = vpop.f32.mrb[206].mxu1  ;;  %v1829_v55 = vpop.f32.mrb[206].mxu0 }
 0x2f0   : > { %v1062_v56 = vpop.f32.mrb[207].mxu1  ;;  %v2155_v57 = vmin.f32 %v3212_v27, %v1827_v51  ;;  %v1830_v58 = vadd.f32 %v1829_v55, %v1060_v53  ;;  %v1831_v59 = vpop.f32.mrb[207].mxu0 }
 0x2f2   : > { %1272 = vmatmul.mubr.bf16.gmra.mrb[204].mxu1 %v451_v50  ;;  %v2156_v60 = vmin.f32 %v3214_v30, %v1830_v58  ;;  %2041 = vmatmul.mubr.bf16.gmra.mrb[56].mxu0 %v451_v50 }
 0x2f3   : > { %1279 = vmatprep.mubr.bf16.mxu1 %v454_v54  ;;  %2048 = vmatprep.mubr.bf16.mxu0 %v454_v54 }
 0x2f5   : > { %v1065_v61 = vpop.f32.mrb[208].mxu1  ;;  %v1834_v62 = vpop.f32.mrb[208].mxu0 }
 0x2f6   : > { %v1067_v63 = vpop.f32.mrb[209].mxu1  ;;  %v1835_v1 = vadd.f32 %v1834_v62, %v1065_v61  ;;  %v1836_v2 = vpop.f32.mrb[209].mxu0 }
 0x2f7   : > { %v1068_v3 = vpop.f32.mrb[210].mxu1  ;;  %v1837_v4 = vpop.f32.mrb[210].mxu0 }
 0x2f8   : > { %v1070_v5 = vpop.f32.mrb[211].mxu1  ;;  %v2157_v6 = vmin.f32 %v2153_v42, %v1835_v1  ;;  %v1838_v7 = vadd.f32 %v1837_v4, %v1068_v3  ;;  %v1839_v8 = vpop.f32.mrb[211].mxu0 }
 0x2fa   : > { %1280 = vmatmul.mubr.bf16.gmra.mrb[208].mxu1 %v453_v0  ;;  %v2158_v9 = vmin.f32 %v2154_v45, %v1838_v7  ;;  %2049 = vmatmul.mubr.bf16.gmra.mrb[60].mxu0 %v453_v0 }
 0x2fd   : > { %v1073_v10 = vpop.f32.mrb[212].mxu1  ;;  %v1842_v11 = vpop.f32.mrb[212].mxu0 }
 0x2fe   : > { %v1075_v12 = vpop.f32.mrb[213].mxu1  ;;  %v1843_v13 = vadd.f32 %v1842_v11, %v1073_v10  ;;  %v1844_v14 = vpop.f32.mrb[213].mxu0 }
 0x2ff   : > { %v1076_v15 = vpop.f32.mrb[214].mxu1  ;;  %v1845_v16 = vpop.f32.mrb[214].mxu0 }
 0x300   : > { %v1078_v17 = vpop.f32.mrb[215].mxu1  ;;  %v2159_v18 = vmin.f32 %v2155_v57, %v1843_v13  ;;  %v1846_v19 = vadd.f32 %v1845_v16, %v1076_v15  ;;  %v1847_v20 = vpop.f32.mrb[215].mxu0 }
 0x302   : > { %v2160_v21 = vmin.f32 %v2156_v60, %v1846_v19 }
 0x305   : > { %v1081_v22 = vpop.f32.mrb[216].mxu1  ;;  %v1850_v23 = vpop.f32.mrb[216].mxu0 }
 0x306   : > { %v1083_v24 = vpop.f32.mrb[217].mxu1  ;;  %v1851_v25 = vadd.f32 %v1850_v23, %v1081_v22  ;;  %v1852_v26 = vpop.f32.mrb[217].mxu0 }
 0x307   : > { %v1084_v27 = vpop.f32.mrb[218].mxu1  ;;  %v1853_v28 = vpop.f32.mrb[218].mxu0 }
 0x308   : > { %v1086_v29 = vpop.f32.mrb[219].mxu1  ;;  %v2161_v30 = vmin.f32 %v2157_v6, %v1851_v25  ;;  %v1854_v31 = vadd.f32 %v1853_v28, %v1084_v27  ;;  %v1855_v32 = vpop.f32.mrb[219].mxu0 }
 0x30a   : > { %v2162_v33 = vmin.f32 %v2158_v9, %v1854_v31 }
 0x30d   : > { %v1089_v34 = vpop.f32.mrb[220].mxu1  ;;  %v1858_v35 = vpop.f32.mrb[220].mxu0 }
 0x30e   : > { %v1091_v36 = vpop.f32.mrb[221].mxu1  ;;  %v1859_v37 = vadd.f32 %v1858_v35, %v1089_v34  ;;  %v1860_v38 = vpop.f32.mrb[221].mxu0 }
 0x30f   : > { %v1092_v39 = vpop.f32.mrb[222].mxu1  ;;  %v1861_v40 = vpop.f32.mrb[222].mxu0 }
 0x310   : > { %v1094_v41 = vpop.f32.mrb[223].mxu1  ;;  %v2163_v42 = vmin.f32 %v2159_v18, %v1859_v37  ;;  %v1862_v43 = vadd.f32 %v1861_v40, %v1092_v39  ;;  %v1863_v44 = vpop.f32.mrb[223].mxu0 }
 0x312   : > { %v2164_v45 = vmin.f32 %v2160_v21, %v1862_v43 }
 0x315   : > { %v1097_v46 = vpop.f32.mrb[224].mxu1  ;;  %v1866_v47 = vpop.f32.mrb[224].mxu0 }
 0x316   : > { %v1099_v48 = vpop.f32.mrb[225].mxu1  ;;  %v1867_v49 = vadd.f32 %v1866_v47, %v1097_v46  ;;  %v1868_v50 = vpop.f32.mrb[225].mxu0 }
 0x317   : > { %v1100_v51 = vpop.f32.mrb[226].mxu1  ;;  %v1869_v52 = vpop.f32.mrb[226].mxu0 }
 0x318   : > { %v1102_v53 = vpop.f32.mrb[227].mxu1  ;;  %v2165_v54 = vmin.f32 %v2161_v30, %v1867_v49  ;;  %v1870_v55 = vadd.f32 %v1869_v52, %v1100_v51  ;;  %v1871_v56 = vpop.f32.mrb[227].mxu0 }
 0x31a   : > { %v2166_v57 = vmin.f32 %v2162_v33, %v1870_v55 }
 0x31d   : > { %v1105_v58 = vpop.f32.mrb[228].mxu1  ;;  %v1874_v59 = vpop.f32.mrb[228].mxu0 }
 0x31e   : > { %v1107_v60 = vpop.f32.mrb[229].mxu1  ;;  %v1875_v61 = vadd.f32 %v1874_v59, %v1105_v58  ;;  %v1876_v62 = vpop.f32.mrb[229].mxu0 }
 0x31f   : > { %v1108_v63 = vpop.f32.mrb[230].mxu1  ;;  %v1877_v0 = vpop.f32.mrb[230].mxu0 }
 0x320   : > { %v1110_v1 = vpop.f32.mrb[231].mxu1  ;;  %v2167_v2 = vmin.f32 %v2163_v42, %v1875_v61  ;;  %v1878_v3 = vadd.f32 %v1877_v0, %v1108_v63  ;;  %v1879_v4 = vpop.f32.mrb[231].mxu0 }
 0x322   : > { %v2168_v5 = vmin.f32 %v2164_v45, %v1878_v3 }
 0x325   : > { %v1113_v6 = vpop.f32.mrb[232].mxu1  ;;  %v1882_v7 = vpop.f32.mrb[232].mxu0 }
 0x326   : > { %v1115_v8 = vpop.f32.mrb[233].mxu1  ;;  %v1883_v9 = vadd.f32 %v1882_v7, %v1113_v6  ;;  %v1884_v10 = vpop.f32.mrb[233].mxu0 }
 0x327   : > { %v1116_v11 = vpop.f32.mrb[234].mxu1  ;;  %v1885_v12 = vpop.f32.mrb[234].mxu0 }
 0x328   : > { %v1118_v13 = vpop.f32.mrb[235].mxu1  ;;  %v2169_v14 = vmin.f32 %v2165_v54, %v1883_v9  ;;  %v1886_v15 = vadd.f32 %v1885_v12, %v1116_v11  ;;  %v1887_v16 = vpop.f32.mrb[235].mxu0 }
 0x32a   : > { %v2170_v17 = vmin.f32 %v2166_v57, %v1886_v15 }
 0x32d   : > { %v1121_v18 = vpop.f32.mrb[236].mxu1  ;;  %v1890_v19 = vpop.f32.mrb[236].mxu0 }
 0x32e   : > { %v1123_v20 = vpop.f32.mrb[237].mxu1  ;;  %v1891_v21 = vadd.f32 %v1890_v19, %v1121_v18  ;;  %v1892_v22 = vpop.f32.mrb[237].mxu0 }
 0x32f   : > { %v1124_v23 = vpop.f32.mrb[238].mxu1  ;;  %v1893_v24 = vpop.f32.mrb[238].mxu0 }
 0x330   : > { %v1126_v25 = vpop.f32.mrb[239].mxu1  ;;  %v2171_v26 = vmin.f32 %v2167_v2, %v1891_v21  ;;  %v1894_v27 = vadd.f32 %v1893_v24, %v1124_v23  ;;  %v1895_v28 = vpop.f32.mrb[239].mxu0 }
 0x332   : > { %v2172_v29 = vmin.f32 %v2168_v5, %v1894_v27 }
 0x335   : > { %v1129_v30 = vpop.f32.mrb[240].mxu1  ;;  %v1898_v31 = vpop.f32.mrb[240].mxu0 }
 0x336   : > { %v1131_v32 = vpop.f32.mrb[241].mxu1  ;;  %v1899_v33 = vadd.f32 %v1898_v31, %v1129_v30  ;;  %v1900_v34 = vpop.f32.mrb[241].mxu0 }
 0x337   : > { %v1132_v35 = vpop.f32.mrb[242].mxu1  ;;  %v1901_v36 = vpop.f32.mrb[242].mxu0 }
 0x338   : > { %v1134_v37 = vpop.f32.mrb[243].mxu1  ;;  %v2173_v38 = vmin.f32 %v2169_v14, %v1899_v33  ;;  %v1902_v39 = vadd.f32 %v1901_v36, %v1132_v35  ;;  %v1903_v40 = vpop.f32.mrb[243].mxu0 }
 0x33a   : > { %v2174_v41 = vmin.f32 %v2170_v17, %v1902_v39 }
 0x33d   : > { %v1137_v42 = vpop.f32.mrb[244].mxu1  ;;  %v1906_v43 = vpop.f32.mrb[244].mxu0 }
 0x33e   : > { %v1139_v44 = vpop.f32.mrb[245].mxu1  ;;  %v1907_v45 = vadd.f32 %v1906_v43, %v1137_v42  ;;  %v1908_v46 = vpop.f32.mrb[245].mxu0 }
 0x33f   : > { %v1140_v47 = vpop.f32.mrb[246].mxu1  ;;  %v1909_v48 = vpop.f32.mrb[246].mxu0 }
 0x340   : > { %v1142_v49 = vpop.f32.mrb[247].mxu1  ;;  %v2175_v50 = vmin.f32 %v2171_v26, %v1907_v45  ;;  %v1910_v51 = vadd.f32 %v1909_v48, %v1140_v47  ;;  %v1911_v52 = vpop.f32.mrb[247].mxu0 }
 0x342   : > { %v2176_v53 = vmin.f32 %v2172_v29, %v1910_v51 }
 0x345   : > { %v1145_v54 = vpop.f32.mrb[248].mxu1  ;;  %v1914_v55 = vpop.f32.mrb[248].mxu0 }
 0x346   : > { %v1147_v56 = vpop.f32.mrb[249].mxu1  ;;  %v1915_v57 = vadd.f32 %v1914_v55, %v1145_v54  ;;  %v1916_v58 = vpop.f32.mrb[249].mxu0 }
 0x347   : > { %v1148_v59 = vpop.f32.mrb[250].mxu1  ;;  %v1917_v60 = vpop.f32.mrb[250].mxu0 }
 0x348   : > { %v1150_v61 = vpop.f32.mrb[251].mxu1  ;;  %v2177_v62 = vmin.f32 %v2173_v38, %v1915_v57  ;;  %v1918_v63 = vadd.f32 %v1917_v60, %v1148_v59  ;;  %v1919_v0 = vpop.f32.mrb[251].mxu0 }
 0x34a   : > { %v2178_v1 = vmin.f32 %v2174_v41, %v1918_v63 }
 0x34d   : > { %v1153_v2 = vpop.f32.mrb[252].mxu1  ;;  %v1922_v3 = vpop.f32.mrb[252].mxu0 }
 0x34e   : > { %v1155_v4 = vpop.f32.mrb[253].mxu1  ;;  %v1923_v5 = vadd.f32 %v1922_v3, %v1153_v2  ;;  %v1924_v6 = vpop.f32.mrb[253].mxu0 }
 0x34f   : > { %v1156_v7 = vpop.f32.mrb[254].mxu1  ;;  %v1925_v8 = vpop.f32.mrb[254].mxu0 }
 0x350   : > { %v1158_v9 = vpop.f32.mrb[255].mxu1  ;;  %v2179_v10 = vmin.f32 %v2175_v50, %v1923_v5  ;;  %v1926_v11 = vadd.f32 %v1925_v8, %v1156_v7  ;;  %v1927_v12 = vpop.f32.mrb[255].mxu0 }
 0x352   : > { %v2180_v13 = vmin.f32 %v2176_v53, %v1926_v11 }
 0x355   : > { %v1161_v14 = vpop.f32.mrb[148].mxu1  ;;  %v1930_v15 = vpop.f32.mrb[0].mxu0 }
 0x356   : > { %v1163_v16 = vpop.f32.mrb[149].mxu1  ;;  %v1931_v17 = vadd.f32 %v1930_v15, %v1161_v14  ;;  %v1932_v18 = vpop.f32.mrb[1].mxu0 }
 0x357   : > { %v1164_v19 = vpop.f32.mrb[150].mxu1  ;;  %v1933_v20 = vpop.f32.mrb[2].mxu0 }
 0x358   : > { %v1166_v21 = vpop.f32.mrb[151].mxu1  ;;  %v2181_v22 = vmin.f32 %v2177_v62, %v1931_v17  ;;  %v1934_v23 = vadd.f32 %v1933_v20, %v1164_v19  ;;  %v1935_v24 = vpop.f32.mrb[3].mxu0 }
 0x35a   : > { %v2182_v25 = vmin.f32 %v2178_v1, %v1934_v23 }
 0x35d   : > { %v1169_v26 = vpop.f32.mrb[152].mxu1  ;;  %v1938_v27 = vpop.f32.mrb[4].mxu0 }
 0x35e   : > { %v1171_v28 = vpop.f32.mrb[153].mxu1  ;;  %v1939_v29 = vadd.f32 %v1938_v27, %v1169_v26  ;;  %v1940_v30 = vpop.f32.mrb[5].mxu0 }
 0x35f   : > { %v1172_v31 = vpop.f32.mrb[154].mxu1  ;;  %v1941_v32 = vpop.f32.mrb[6].mxu0 }
 0x360   : > { %v1174_v33 = vpop.f32.mrb[155].mxu1  ;;  %v2183_v34 = vmin.f32 %v2179_v10, %v1939_v29  ;;  %v1942_v35 = vadd.f32 %v1941_v32, %v1172_v31  ;;  %v1943_v36 = vpop.f32.mrb[7].mxu0 }
 0x362   : > { %v2184_v37 = vmin.f32 %v2180_v13, %v1942_v35 }
 0x365   : > { %v1177_v38 = vpop.f32.mrb[156].mxu1  ;;  %v1946_v39 = vpop.f32.mrb[8].mxu0 }
 0x366   : > { %v1179_v40 = vpop.f32.mrb[157].mxu1  ;;  %v1947_v41 = vadd.f32 %v1946_v39, %v1177_v38  ;;  %v1948_v42 = vpop.f32.mrb[9].mxu0 }
 0x367   : > { %v1180_v43 = vpop.f32.mrb[158].mxu1  ;;  %v1949_v44 = vpop.f32.mrb[10].mxu0 }
 0x368   : > { %v1182_v45 = vpop.f32.mrb[159].mxu1  ;;  %v2185_v46 = vmin.f32 %v2181_v22, %v1947_v41  ;;  %v1950_v47 = vadd.f32 %v1949_v44, %v1180_v43  ;;  %v1951_v48 = vpop.f32.mrb[11].mxu0 }
 0x36a   : > { %v2186_v49 = vmin.f32 %v2182_v25, %v1950_v47 }
 0x36d   : > { %v1185_v50 = vpop.f32.mrb[160].mxu1  ;;  %v1954_v51 = vpop.f32.mrb[12].mxu0 }
 0x36e   : > { %v1187_v52 = vpop.f32.mrb[161].mxu1  ;;  %v1955_v53 = vadd.f32 %v1954_v51, %v1185_v50  ;;  %v1956_v54 = vpop.f32.mrb[13].mxu0 }
 0x36f   : > { %v1188_v55 = vpop.f32.mrb[162].mxu1  ;;  %v1957_v56 = vpop.f32.mrb[14].mxu0 }
 0x370   : > { %v1190_v57 = vpop.f32.mrb[163].mxu1  ;;  %v2187_v58 = vmin.f32 %v2183_v34, %v1955_v53  ;;  %v1958_v59 = vadd.f32 %v1957_v56, %v1188_v55  ;;  %v1959_v60 = vpop.f32.mrb[15].mxu0 }
 0x372   : > { %v2188_v61 = vmin.f32 %v2184_v37, %v1958_v59 }
 0x375   : > { %v1193_v62 = vpop.f32.mrb[164].mxu1  ;;  %v1962_v63 = vpop.f32.mrb[16].mxu0 }
 0x376   : > { %v1195_v0 = vpop.f32.mrb[165].mxu1  ;;  %v1963_v1 = vadd.f32 %v1962_v63, %v1193_v62  ;;  %v1964_v2 = vpop.f32.mrb[17].mxu0 }
 0x377   : > { %v1196_v3 = vpop.f32.mrb[166].mxu1  ;;  %v1965_v4 = vpop.f32.mrb[18].mxu0 }
 0x378   : > { %v1198_v5 = vpop.f32.mrb[167].mxu1  ;;  %v2189_v6 = vmin.f32 %v2185_v46, %v1963_v1  ;;  %v1966_v7 = vadd.f32 %v1965_v4, %v1196_v3  ;;  %v1967_v8 = vpop.f32.mrb[19].mxu0 }
 0x37a   : > { %v2190_v9 = vmin.f32 %v2186_v49, %v1966_v7 }
 0x37d   : > { %v1201_v10 = vpop.f32.mrb[168].mxu1  ;;  %v1970_v11 = vpop.f32.mrb[20].mxu0 }
 0x37e   : > { %v1203_v12 = vpop.f32.mrb[169].mxu1  ;;  %v1971_v13 = vadd.f32 %v1970_v11, %v1201_v10  ;;  %v1972_v14 = vpop.f32.mrb[21].mxu0 }
 0x37f   : > { %v1204_v15 = vpop.f32.mrb[170].mxu1  ;;  %v1973_v16 = vpop.f32.mrb[22].mxu0 }
 0x380   : > { %v1206_v17 = vpop.f32.mrb[171].mxu1  ;;  %v2191_v18 = vmin.f32 %v2187_v58, %v1971_v13  ;;  %v1974_v19 = vadd.f32 %v1973_v16, %v1204_v15  ;;  %v1975_v20 = vpop.f32.mrb[23].mxu0 }
 0x382   : > { %v2192_v21 = vmin.f32 %v2188_v61, %v1974_v19 }
 0x385   : > { %v1209_v22 = vpop.f32.mrb[172].mxu1  ;;  %v1978_v23 = vpop.f32.mrb[24].mxu0 }
 0x386   : > { %v1211_v24 = vpop.f32.mrb[173].mxu1  ;;  %v1979_v25 = vadd.f32 %v1978_v23, %v1209_v22  ;;  %v1980_v26 = vpop.f32.mrb[25].mxu0 }
 0x387   : > { %v1212_v27 = vpop.f32.mrb[174].mxu1  ;;  %v1981_v28 = vpop.f32.mrb[26].mxu0 }
 0x388   : > { %v1214_v29 = vpop.f32.mrb[175].mxu1  ;;  %v2193_v30 = vmin.f32 %v2189_v6, %v1979_v25  ;;  %v1982_v31 = vadd.f32 %v1981_v28, %v1212_v27  ;;  %v1983_v32 = vpop.f32.mrb[27].mxu0 }
 0x38a   : > { %v2194_v33 = vmin.f32 %v2190_v9, %v1982_v31 }
 0x38d   : > { %v1217_v34 = vpop.f32.mrb[176].mxu1  ;;  %v1986_v35 = vpop.f32.mrb[28].mxu0 }
 0x38e   : > { %v1219_v36 = vpop.f32.mrb[177].mxu1  ;;  %v1987_v37 = vadd.f32 %v1986_v35, %v1217_v34  ;;  %v1988_v38 = vpop.f32.mrb[29].mxu0 }
 0x38f   : > { %v1220_v39 = vpop.f32.mrb[178].mxu1  ;;  %v1989_v40 = vpop.f32.mrb[30].mxu0 }
 0x390   : > { %v1222_v41 = vpop.f32.mrb[179].mxu1  ;;  %v2195_v42 = vmin.f32 %v2191_v18, %v1987_v37  ;;  %v1990_v43 = vadd.f32 %v1989_v40, %v1220_v39  ;;  %v1991_v44 = vpop.f32.mrb[31].mxu0 }
 0x392   : > { %v2196_v45 = vmin.f32 %v2192_v21, %v1990_v43 }
 0x395   : > { %v1225_v46 = vpop.f32.mrb[180].mxu1  ;;  %v1994_v47 = vpop.f32.mrb[32].mxu0 }
 0x396   : > { %v1227_v48 = vpop.f32.mrb[181].mxu1  ;;  %v1995_v49 = vadd.f32 %v1994_v47, %v1225_v46  ;;  %v1996_v50 = vpop.f32.mrb[33].mxu0 }
 0x397   : > { %v1228_v51 = vpop.f32.mrb[182].mxu1  ;;  %v1997_v52 = vpop.f32.mrb[34].mxu0 }
 0x398   : > { %v1230_v53 = vpop.f32.mrb[183].mxu1  ;;  %v2197_v54 = vmin.f32 %v2193_v30, %v1995_v49  ;;  %v1998_v55 = vadd.f32 %v1997_v52, %v1228_v51  ;;  %v1999_v56 = vpop.f32.mrb[35].mxu0 }
 0x39a   : > { %v2198_v57 = vmin.f32 %v2194_v33, %v1998_v55 }
 0x39d   : > { %v1233_v58 = vpop.f32.mrb[184].mxu1  ;;  %v2002_v59 = vpop.f32.mrb[36].mxu0 }
 0x39e   : > { %v1235_v60 = vpop.f32.mrb[185].mxu1  ;;  %v2003_v61 = vadd.f32 %v2002_v59, %v1233_v58  ;;  %v2004_v62 = vpop.f32.mrb[37].mxu0 }
 0x39f   : > { %v1236_v63 = vpop.f32.mrb[186].mxu1  ;;  %v2005_v0 = vpop.f32.mrb[38].mxu0 }
 0x3a0   : > { %v1238_v1 = vpop.f32.mrb[187].mxu1  ;;  %v2199_v2 = vmin.f32 %v2195_v42, %v2003_v61  ;;  %v2006_v3 = vadd.f32 %v2005_v0, %v1236_v63  ;;  %v2007_v4 = vpop.f32.mrb[39].mxu0 }
 0x3a2   : > { %v2200_v5 = vmin.f32 %v2196_v45, %v2006_v3 }
 0x3a5   : > { %v1241_v6 = vpop.f32.mrb[188].mxu1  ;;  %v2010_v7 = vpop.f32.mrb[40].mxu0 }
 0x3a6   : > { %v1243_v8 = vpop.f32.mrb[189].mxu1  ;;  %v2011_v9 = vadd.f32 %v2010_v7, %v1241_v6  ;;  %v2012_v10 = vpop.f32.mrb[41].mxu0 }
 0x3a7   : > { %v1244_v11 = vpop.f32.mrb[190].mxu1  ;;  %v2013_v12 = vpop.f32.mrb[42].mxu0 }
 0x3a8   : > { %v1246_v13 = vpop.f32.mrb[191].mxu1  ;;  %v2201_v14 = vmin.f32 %v2197_v54, %v2011_v9  ;;  %v2014_v15 = vadd.f32 %v2013_v12, %v1244_v11  ;;  %v2015_v16 = vpop.f32.mrb[43].mxu0 }
 0x3aa   : > { %v2202_v17 = vmin.f32 %v2198_v57, %v2014_v15 }
 0x3ad   : > { %v1249_v18 = vpop.f32.mrb[192].mxu1  ;;  %v2018_v19 = vpop.f32.mrb[44].mxu0 }
 0x3ae   : > { %v1251_v20 = vpop.f32.mrb[193].mxu1  ;;  %v2019_v21 = vadd.f32 %v2018_v19, %v1249_v18  ;;  %v2020_v22 = vpop.f32.mrb[45].mxu0 }
 0x3af   : > { %v1252_v23 = vpop.f32.mrb[194].mxu1  ;;  %v2021_v24 = vpop.f32.mrb[46].mxu0  ;;  %v2222_v22 = vld [vmem:[%s2854_s12] sm:$0x1] }
 0x3b0   : > { %v1254_v25 = vpop.f32.mrb[195].mxu1  ;;  %v2203_v26 = vmin.f32 %v2199_v2, %v2019_v21  ;;  %v2022_v27 = vadd.f32 %v2021_v24, %v1252_v23  ;;  %v2023_v28 = vpop.f32.mrb[47].mxu0 }
 0x3b2   : > { %v2204_v29 = vmin.f32 %v2200_v5, %v2022_v27 }
 0x3b5   : > { %v1257_v30 = vpop.f32.mrb[196].mxu1  ;;  %v2026_v31 = vpop.f32.mrb[48].mxu0 }
 0x3b6   : > { %v1259_v32 = vpop.f32.mrb[197].mxu1  ;;  %v2027_v33 = vadd.f32 %v2026_v31, %v1257_v30  ;;  %v2028_v34 = vpop.f32.mrb[49].mxu0 }
 0x3b7   : > { %v1260_v35 = vpop.f32.mrb[198].mxu1  ;;  %v2029_v36 = vpop.f32.mrb[50].mxu0 }
 0x3b8   : > { %v1262_v37 = vpop.f32.mrb[199].mxu1  ;;  %v2205_v38 = vmin.f32 %v2201_v14, %v2027_v33  ;;  %v2030_v39 = vadd.f32 %v2029_v36, %v1260_v35  ;;  %v2031_v40 = vpop.f32.mrb[51].mxu0 }
 0x3ba   : > { %v2206_v41 = vmin.f32 %v2202_v17, %v2030_v39 }
 0x3bd   : > { %v1265_v42 = vpop.f32.mrb[200].mxu1  ;;  %v2034_v43 = vpop.f32.mrb[52].mxu0 }
 0x3be   : > { %v1267_v44 = vpop.f32.mrb[201].mxu1  ;;  %v2035_v45 = vadd.f32 %v2034_v43, %v1265_v42  ;;  %v2036_v46 = vpop.f32.mrb[53].mxu0 }
 0x3bf   : > { %v1268_v47 = vpop.f32.mrb[202].mxu1  ;;  %v2037_v48 = vpop.f32.mrb[54].mxu0 }
 0x3c0   : > { %v1270_v49 = vpop.f32.mrb[203].mxu1  ;;  %v2207_v50 = vmin.f32 %v2203_v26, %v2035_v45  ;;  %v2038_v51 = vadd.f32 %v2037_v48, %v1268_v47  ;;  %v2039_v52 = vpop.f32.mrb[55].mxu0 }
 0x3c2   : > { %v2208_v53 = vmin.f32 %v2204_v29, %v2038_v51 }
 0x3c5   : > { %v1273_v54 = vpop.f32.mrb[204].mxu1  ;;  %v2042_v55 = vpop.f32.mrb[56].mxu0 }
 0x3c6   : > { %v1275_v56 = vpop.f32.mrb[205].mxu1  ;;  %v2043_v57 = vadd.f32 %v2042_v55, %v1273_v54  ;;  %v2044_v58 = vpop.f32.mrb[57].mxu0 }
 0x3c7   : > { %v1276_v59 = vpop.f32.mrb[206].mxu1  ;;  %v2045_v60 = vpop.f32.mrb[58].mxu0 }
 0x3c8   : > { %v1278_v61 = vpop.f32.mrb[207].mxu1  ;;  %v2209_v62 = vmin.f32 %v2205_v38, %v2043_v57  ;;  %v2046_v63 = vadd.f32 %v2045_v60, %v1276_v59  ;;  %v2047_v0 = vpop.f32.mrb[59].mxu0 }
 0x3ca   : > { %v2210_v1 = vmin.f32 %v2206_v41, %v2046_v63 }
 0x3cc   : > { %v2213_v2 = vmin.f32 %v2209_v62, %v2210_v1 }
 0x3cd   : > { %v1281_v3 = vpop.f32.mrb[208].mxu1  ;;  %v2050_v4 = vpop.f32.mrb[60].mxu0 }
 0x3ce   : > { %v1283_v5 = vpop.f32.mrb[209].mxu1  ;;  %v2051_v6 = vadd.f32 %v2050_v4, %v1281_v3  ;;  %v2052_v7 = vpop.f32.mrb[61].mxu0 }
 0x3cf   : > { %v1284_v8 = vpop.f32.mrb[210].mxu1  ;;  %v2053_v9 = vpop.f32.mrb[62].mxu0 }
 0x3d0   : > { %v1286_v10 = vpop.f32.mrb[211].mxu1  ;;  %v2211_v11 = vmin.f32 %v2207_v50, %v2051_v6  ;;  %v2054_v12 = vadd.f32 %v2053_v9, %v1284_v8  ;;  %v2055_v13 = vpop.f32.mrb[63].mxu0 }
 0x3d2   : > { %v2212_v14 = vmin.f32 %v2208_v53, %v2054_v12 }
 0x3d4   : > { %v2214_v15 = vmin.f32 %v2211_v11, %v2212_v14 }
 0x3d6   : > { %v2215_v16 = vmin.f32 %v2213_v2, %v2214_v15 }
 0x3d8   : > { %v2216_v17 = vrot.slane %v2215_v16, 4 }
 0x3da   : > { %v2217_v18 = vmin.f32 %v2215_v16, %v2216_v17 }
 0x3dc   : > { %v2218_v19 = vrot.slane %v2217_v18, 2 }
 0x3de   : > { %v2219_v20 = vmin.f32 %v2217_v18, %v2218_v19 }
 0x3e0   : > { %v2220_v21 = vrot.slane %v2219_v20, 1 }
 0x3e2   : > { %v2221_v23 = vmin.f32 %v2219_v20, %v2220_v21 }
 0x3e4   : > { %v2223_v24 = vmin.f32 %v2222_v22, %v2221_v23 }
 0x3e6   : > { %2224 = vst [vmem:[%s2854_s12] sm:$0x1] %v2223_v24 }
 0x3e7 PF: > { %s16_s19 = sadd.s32 1, %s2710_s19   ;;  %s3254_s12 = smov %s2686_s13 }
 0x3e8   : > { %p13_p7 = scmp.ge.s32.totalorder %s16_s19, 10   ;;  %s3255_s13 = smov %s2690_s14 }
 0x3e9   : > { %s3256_s14 = smov %s2803_s6  ;;  %s3257_s15 = smov %s2702_s17 }
 0x3ea   : > { %s3258_s16 = smov %s2706_s18  ;;  %s3259_s17 = smov %s3262_s21 }
 0x3eb   : > { %s3260_s18 = smov %s3266_s22  ;;  %15 = sbr.rel (!%p13_p7) target bundleno = 5 (0x5), region = 76 }
 0x3f2   :  { %2242 = vsyncpa [#allocation3], 1 }
 0x3f3   :  { %2244 = vsyncpa [#allocation3 + $0x1], 1 }

</bundles_post_ra>
